<compile_context>
chip_gen: v7x
topology: tpu7x:2x2x1
jax: 0.10.0
libtpu: 0.0.40
codegen_flags: <defaults>
</compile_context>

<pallas_src>
import functools
import math

import jax
import jax.numpy as jnp
from jax.experimental import pallas as pl
from jax.experimental.pallas import tpu as pltpu

# ----------------- small model config (structure follows DINOv2 ViT-*/14) ---
PATCH = 14
IMG = 28            # 2x2 = 4 patches
IN_CH = 3
DIM = 32
DEPTH = 2
HEADS = 2
HEAD_DIM = DIM // HEADS
MLP_DIM = 4 * DIM
LN_EPS = 1e-6
LS_INIT = 1e-5      # LayerScale init value used by DINOv2

GRID_H = IMG // PATCH
N_PATCH = GRID_H * GRID_H
SEQ = 1 + N_PATCH                        # CLS + patches
K_RAW = IN_CH * PATCH * PATCH            # 588
K_PAD = ((K_RAW + 127) // 128) * 128     # 640 : MXU/lane aligned K
ATTN_SCALE = 1.0 / math.sqrt(HEAD_DIM)

# slot layout of the packed per-block vector params [DEPTH, 8, DIM]
_LN1_G, _LN1_B, _PROJ_B, _LS1, _LN2_G, _LN2_B, _FC2_B, _LS2 = range(8)


# --------------------------- fused forward kernel ---------------------------

def _fused_vit_kernel(patches_ref,   # [1, SEQ, K_PAD]   (row 0 = zeros = CLS slot)
                      pw_ref,        # [K_PAD, DIM]      patch-embed weight (padded, pre-T)
                      bias0_ref,     # [SEQ, DIM]        cls_tok+pos / pos+patch_bias
                      vec_ref,       # [DEPTH, 8, DIM]   packed LN/bias/LayerScale vectors
                      qkvw_ref,      # [DEPTH, DIM, 3*DIM]
                      qkvb_ref,      # [DEPTH, 1, 3*DIM]
                      projw_ref,     # [DEPTH, DIM, DIM]
                      fc1w_ref,      # [DEPTH, DIM, MLP_DIM]
                      fc1b_ref,      # [DEPTH, 1, MLP_DIM]
                      fc2w_ref,      # [DEPTH, MLP_DIM, DIM]
                      finvec_ref,    # [2, DIM]          final norm gamma/beta
                      o_ref):        # [1, 1, DIM]

    def ln(x, g, b):
        mu = jnp.mean(x, axis=-1, keepdims=True)
        xc = x - mu
        var = jnp.mean(xc * xc, axis=-1, keepdims=True)
        return xc * jax.lax.rsqrt(var + LN_EPS) * g + b

    # ---- patch embed + CLS + pos-embed (row 0 of patches is all zeros, so it
    #      becomes exactly cls_token + pos_embed[0] after the fused bias add).
    patches = patches_ref[0]                                        # [SEQ, K_PAD]
    h = jnp.dot(patches, pw_ref[...], preferred_element_type=jnp.float32)
    h = h + bias0_ref[...]                                          # [SEQ, DIM]

    # ---- transformer blocks (DEPTH=2, statically unrolled; weights resident) ----
    for d in range(DEPTH):
        vec = vec_ref[d]                                            # [8, DIM]
        ln1_g, ln1_b = vec[_LN1_G:_LN1_G + 1, :], vec[_LN1_B:_LN1_B + 1, :]
        proj_b, ls1 = vec[_PROJ_B:_PROJ_B + 1, :], vec[_LS1:_LS1 + 1, :]
        ln2_g, ln2_b = vec[_LN2_G:_LN2_G + 1, :], vec[_LN2_B:_LN2_B + 1, :]
        fc2_b, ls2 = vec[_FC2_B:_FC2_B + 1, :], vec[_LS2:_LS2 + 1, :]
        qkv_w = qkvw_ref[d]
        proj_w = projw_ref[d]

        # --- attention branch: LN -> fused QKV matmul -> per-head SDPA ------
        xn = ln(h, ln1_g, ln1_b)
        qkv = jnp.dot(xn, qkv_w, preferred_element_type=jnp.float32)
        qkv = qkv + qkvb_ref[d]                                     # [SEQ, 3*DIM]

        attn = None
        for hd in range(HEADS):
            lo = hd * HEAD_DIM
            qh = qkv[:, lo:lo + HEAD_DIM]                           # [SEQ, dh]
            kh = qkv[:, DIM + lo:DIM + lo + HEAD_DIM]
            vh = qkv[:, 2 * DIM + lo:2 * DIM + lo + HEAD_DIM]
            s = jnp.dot(qh, kh.T, preferred_element_type=jnp.float32) * ATTN_SCALE
            s = s - jnp.max(s, axis=-1, keepdims=True)
            p = jnp.exp(s)
            p = p * pl.reciprocal(jnp.sum(p, axis=-1, keepdims=True), approx=True)
            oh = jnp.dot(p, vh, preferred_element_type=jnp.float32)  # [SEQ, dh]
            # fold this head through its rows of proj_w -> no head concat needed
            contrib = jnp.dot(oh, proj_w[lo:lo + HEAD_DIM, :],
                              preferred_element_type=jnp.float32)    # [SEQ, DIM]
            attn = contrib if attn is None else attn + contrib
        attn = attn + proj_b
        h = h + ls1 * attn                                           # LayerScale residual

        # --- MLP branch: LN -> fc1 -> GELU -> fc2 ---------------------------
        xn = ln(h, ln2_g, ln2_b)
        m = jnp.dot(xn, fc1w_ref[d], preferred_element_type=jnp.float32) + fc1b_ref[d]
        # TODO(synk): DINOv2 uses exact (erf) GELU; tanh approximation used
        # here for robust Mosaic lowering.
        m = jax.nn.gelu(m, approximate=True)
        m = jnp.dot(m, fc2w_ref[d], preferred_element_type=jnp.float32) + fc2_b
        h = h + ls2 * m                                              # LayerScale residual

    # ---- final LN on the CLS row only, then L2 normalize (F.normalize eps) ----
    cls = ln(h[0:1, :], finvec_ref[0:1, :], finvec_ref[1:2, :])      # [1, DIM]
    n2 = jnp.sum(cls * cls, axis=-1, keepdims=True)
    cls = cls * jax.lax.rsqrt(jnp.maximum(n2, 1e-24))                # == x / max(||x||,1e-12)
    o_ref[0] = cls.astype(o_ref.dtype)


def fused_vit_call(prep, patches):
    """patches: [B, SEQ, K_PAD] (row 0 zero, K zero-padded) -> [B, 1, DIM]."""
    B = patches.shape[0]
    return pl.pallas_call(
        _fused_vit_kernel,
        out_shape=jax.ShapeDtypeStruct((B, 1, DIM), jnp.float32),
        grid=(B,),
        in_specs=[
            pl.BlockSpec((1, SEQ, K_PAD), lambda b: (b, 0, 0)),          # per-batch patches
            pl.BlockSpec((K_PAD, DIM), lambda b: (0, 0)),                # weights: resident
            pl.BlockSpec((SEQ, DIM), lambda b: (0, 0)),
            pl.BlockSpec((DEPTH, 8, DIM), lambda b: (0, 0, 0)),
            pl.BlockSpec((DEPTH, DIM, 3 * DIM), lambda b: (0, 0, 0)),
            pl.BlockSpec((DEPTH, 1, 3 * DIM), lambda b: (0, 0, 0)),
            pl.BlockSpec((DEPTH, DIM, DIM), lambda b: (0, 0, 0)),
            pl.BlockSpec((DEPTH, DIM, MLP_DIM), lambda b: (0, 0, 0)),
            pl.BlockSpec((DEPTH, 1, MLP_DIM), lambda b: (0, 0, 0)),
            pl.BlockSpec((DEPTH, MLP_DIM, DIM), lambda b: (0, 0, 0)),
            pl.BlockSpec((2, DIM), lambda b: (0, 0)),
        ],
        out_specs=pl.BlockSpec((1, 1, DIM), lambda b: (b, 0, 0)),
        compiler_params=pltpu.CompilerParams(
            dimension_semantics=("parallel",)),   # batch sharding across v7x's 2 TCs
    )(patches, prep["patch_w"], prep["bias0"], prep["vecs"], prep["qkv_w"],
      prep["qkv_b"], prep["proj_w"], prep["fc1_w"], prep["fc1_b"],
      prep["fc2_w"], prep["fin_vec"])


# ------------------------------ parameters ----------------------------------

def init_params(key):
    """Parameters in their native PyTorch layouts (Conv2d weight etc.)."""
    ks = jax.random.split(key, 4)

    def nrm(k, shape, scale=0.02):
        return scale * jax.random.normal(k, shape, dtype=jnp.float32)

    params = {
        "patch_w": nrm(ks[0], (DIM, IN_CH, PATCH, PATCH)),   # Conv2d weight layout
        "patch_b": jnp.zeros((DIM,), jnp.float32),
        "cls_token": nrm(ks[1], (1, 1, DIM)),
        "pos_embed": nrm(ks[2], (1, SEQ, DIM)),
        "blocks": [],
        "norm_g": jnp.ones((DIM,), jnp.float32),
        "norm_b": jnp.zeros((DIM,), jnp.float32),
    }
    bkeys = jax.random.split(ks[3], DEPTH)
    for d in range(DEPTH):
        kk = jax.random.split(bkeys[d], 4)
        params["blocks"].append({
            "ln1_g": jnp.ones((DIM,), jnp.float32),
            "ln1_b": jnp.zeros((DIM,), jnp.float32),
            "qkv_w": nrm(kk[0], (DIM, 3 * DIM)),
            "qkv_b": jnp.zeros((3 * DIM,), jnp.float32),
            "proj_w": nrm(kk[1], (DIM, DIM)),
            "proj_b": jnp.zeros((DIM,), jnp.float32),
            "ls1": LS_INIT * jnp.ones((DIM,), jnp.float32),
            "ln2_g": jnp.ones((DIM,), jnp.float32),
            "ln2_b": jnp.zeros((DIM,), jnp.float32),
            "fc1_w": nrm(kk[2], (DIM, MLP_DIM)),
            "fc1_b": jnp.zeros((MLP_DIM,), jnp.float32),
            "fc2_w": nrm(kk[3], (MLP_DIM, DIM)),
            "fc2_b": jnp.zeros((DIM,), jnp.float32),
            "ls2": LS_INIT * jnp.ones((DIM,), jnp.float32),
        })
    return params


def prepare_params(params):
    """One-time (outside jit) repack: flatten/pad patch-embed weight, pre-add
    cls/pos/patch biases, stack per-block weights along DEPTH, pack small
    per-block vectors into one [DEPTH, 8, DIM] slab."""
    w = params["patch_w"].reshape(DIM, K_RAW).T                    # [K_RAW, DIM]
    w = jnp.pad(w, ((0, K_PAD - K_RAW), (0, 0)))                   # K aligned to 128
    pos = params["pos_embed"][0]                                   # [SEQ, DIM]
    bias0 = jnp.concatenate(
        [params["cls_token"][0, 0][None, :] + pos[0:1],            # CLS row
         pos[1:] + params["patch_b"][None, :]], axis=0)            # patch rows

    vecs, qkvw, qkvb, projw, fc1w, fc1b, fc2w = [], [], [], [], [], [], []
    for blk in params["blocks"]:
        vecs.append(jnp.stack([blk["ln1_g"], blk["ln1_b"], blk["proj_b"], blk["ls1"],
                               blk["ln2_g"], blk["ln2_b"], blk["fc2_b"], blk["ls2"]],
                              axis=0))
        qkvw.append(blk["qkv_w"])
        qkvb.append(blk["qkv_b"][None, :])
        projw.append(blk["proj_w"])
        fc1w.append(blk["fc1_w"])
        fc1b.append(blk["fc1_b"][None, :])
        fc2w.append(blk["fc2_w"])

    return {
        "patch_w": w,
        "bias0": bias0,
        "vecs": jnp.stack(vecs),          # [DEPTH, 8, DIM]
        "qkv_w": jnp.stack(qkvw),         # [DEPTH, DIM, 3*DIM]
        "qkv_b": jnp.stack(qkvb),         # [DEPTH, 1, 3*DIM]
        "proj_w": jnp.stack(projw),       # [DEPTH, DIM, DIM]
        "fc1_w": jnp.stack(fc1w),         # [DEPTH, DIM, MLP_DIM]
        "fc1_b": jnp.stack(fc1b),         # [DEPTH, 1, MLP_DIM]
        "fc2_w": jnp.stack(fc2w),         # [DEPTH, MLP_DIM, DIM]
        "fin_vec": jnp.stack([params["norm_g"], params["norm_b"]], axis=0),  # [2, DIM]
    }


# ------------------------------ forward pass ---------------------------------

def vit_wrapper_forward(prep, x):
    """x: [B, C, H, W] (NCHW). Returns L2-normalized CLS features [B, DIM]."""
    B = x.shape[0]
    # Patch extraction (Conv2d k=s=PATCH as matmul): (c, kh, kw) flatten order
    # matches the PyTorch Conv2d weight layout.  Prepend a zero row as the CLS
    # slot and zero-pad K to the MXU-aligned K_PAD (weight padded to match).
    patches = x.reshape(B, IN_CH, GRID_H, PATCH, GRID_H, PATCH)
    patches = patches.transpose(0, 2, 4, 1, 3, 5).reshape(B, N_PATCH, K_RAW)
    patches = jnp.pad(patches, ((0, 0), (1, 0), (0, K_PAD - K_RAW)))
    out = fused_vit_call(prep, patches)            # [B, 1, DIM]
    return out.reshape(B, DIM)                     # flatten(1) (no-op for [B, D])


# ------------------------- pure-JAX reference (check) -------------------------

def vit_wrapper_reference(params, x):
    P = jax.lax.Precision.HIGHEST
    mm = functools.partial(jnp.matmul, precision=P)
    B = x.shape[0]
    patches = x.reshape(B, IN_CH, GRID_H, PATCH, GRID_H, PATCH)
    patches = patches.transpose(0, 2, 4, 1, 3, 5).reshape(B, N_PATCH, K_RAW)
    tok = mm(patches, params["patch_w"].reshape(DIM, K_RAW).T) + params["patch_b"]
    cls = jnp.broadcast_to(params["cls_token"], (B, 1, DIM))
    h = jnp.concatenate([cls, tok], axis=1) + params["pos_embed"]

    def ln(x, g, b):
        mu = x.mean(-1, keepdims=True)
        var = ((x - mu) ** 2).mean(-1, keepdims=True)
        return (x - mu) / jnp.sqrt(var + LN_EPS) * g + b

    for blk in params["blocks"]:
        xn = ln(h, blk["ln1_g"], blk["ln1_b"])
        qkv = mm(xn, blk["qkv_w"]) + blk["qkv_b"]
        qkv = qkv.reshape(B, SEQ, 3, HEADS, HEAD_DIM).transpose(2, 0, 3, 1, 4)
        q, k, v = qkv[0], qkv[1], qkv[2]
        s = jnp.einsum("bhqd,bhkd->bhqk", q, k, precision=P) * ATTN_SCALE
        p = jax.nn.softmax(s, axis=-1)
        o = jnp.einsum("bhqk,bhkd->bhqd", p, v, precision=P)
        o = o.transpose(0, 2, 1, 3).reshape(B, SEQ, DIM)
        o = mm(o, blk["proj_w"]) + blk["proj_b"]
        h = h + blk["ls1"] * o
        xn = ln(h, blk["ln2_g"], blk["ln2_b"])
        m = jax.nn.gelu(mm(xn, blk["fc1_w"]) + blk["fc1_b"], approximate=True)
        m = mm(m, blk["fc2_w"]) + blk["fc2_b"]
        h = h + blk["ls2"] * m

    h = ln(h, params["norm_g"], params["norm_b"])
    feats = h[:, 0]
    n = jnp.maximum(jnp.linalg.norm(feats, axis=-1, keepdims=True), 1e-12)
    return feats / n


# ---------------------------------- main -------------------------------------

if __name__ == "__main__":
    key = jax.random.PRNGKey(0)
    pkey, xkey = jax.random.split(key)
    params = init_params(pkey)
    prep = prepare_params(params)                        # one-time, outside jit
    x = jax.random.normal(xkey, (2, IN_CH, IMG, IMG), dtype=jnp.float32)

    fwd = jax.jit(vit_wrapper_forward)
    out = jax.block_until_ready(fwd(prep, x))

    assert out.shape == (2, DIM)
    assert bool(jnp.all(jnp.isfinite(out)))
    norms = jnp.linalg.norm(out, axis=-1)
    assert bool(jnp.allclose(norms, 1.0, atol=1e-4))

    ref = jax.block_until_ready(jax.jit(vit_wrapper_reference)(params, x))
    assert bool(jnp.allclose(out, ref, rtol=1e-2, atol=1e-2))

    print("KERNEL_OK")
</pallas_src>

<mosaic_0001>
module attributes {stable_mosaic.version = 11 : i64} {
  func.func @_fused_vit_kernel(%arg0: i32, %arg1: memref<1x5x640xf32, #tpu.memory_space<vmem>>, %arg2: memref<640x32xf32, #tpu.memory_space<vmem>>, %arg3: memref<5x32xf32, #tpu.memory_space<vmem>>, %arg4: memref<2x8x32xf32, #tpu.memory_space<vmem>>, %arg5: memref<2x32x96xf32, #tpu.memory_space<vmem>>, %arg6: memref<2x1x96xf32, #tpu.memory_space<vmem>>, %arg7: memref<2x32x32xf32, #tpu.memory_space<vmem>>, %arg8: memref<2x32x128xf32, #tpu.memory_space<vmem>>, %arg9: memref<2x1x128xf32, #tpu.memory_space<vmem>>, %arg10: memref<2x128x32xf32, #tpu.memory_space<vmem>>, %arg11: memref<2x32xf32, #tpu.memory_space<vmem>>, %arg12: memref<1x1x32xf32, #tpu.memory_space<vmem>>) attributes {dimension_semantics = [#tpu.dimension_semantics<parallel>], iteration_bounds = array<i64: 2>, scalar_prefetch = 0 : i64, scratch_operands = 0 : i64, tpu.core_type = #tpu.core_type<tc>, window_params = [{transform_indices = @transform_0, window_bounds = array<i64: 1, 5, 640>}, {pipeline_mode = #tpu.pipeline_mode<synchronous>, transform_indices = @transform_1, window_bounds = array<i64: 640, 32>}, {pipeline_mode = #tpu.pipeline_mode<synchronous>, transform_indices = @transform_2, window_bounds = array<i64: 5, 32>}, {pipeline_mode = #tpu.pipeline_mode<synchronous>, transform_indices = @transform_3, window_bounds = array<i64: 2, 8, 32>}, {pipeline_mode = #tpu.pipeline_mode<synchronous>, transform_indices = @transform_4, window_bounds = array<i64: 2, 32, 96>}, {pipeline_mode = #tpu.pipeline_mode<synchronous>, transform_indices = @transform_5, window_bounds = array<i64: 2, 1, 96>}, {pipeline_mode = #tpu.pipeline_mode<synchronous>, transform_indices = @transform_6, window_bounds = array<i64: 2, 32, 32>}, {pipeline_mode = #tpu.pipeline_mode<synchronous>, transform_indices = @transform_7, window_bounds = array<i64: 2, 32, 128>}, {pipeline_mode = #tpu.pipeline_mode<synchronous>, transform_indices = @transform_8, window_bounds = array<i64: 2, 1, 128>}, {pipeline_mode = #tpu.pipeline_mode<synchronous>, transform_indices = @transform_9, window_bounds = array<i64: 2, 128, 32>}, {pipeline_mode = #tpu.pipeline_mode<synchronous>, transform_indices = @transform_10, window_bounds = array<i64: 2, 32>}, {transform_indices = @transform_11, window_bounds = array<i64: 1, 1, 32>}]} {
    %c0 = arith.constant 0 : index
    %c0_0 = arith.constant 0 : index
    %c0_1 = arith.constant 0 : index
    %0 = vector.load %arg1[%c0, %c0_0, %c0_1] : memref<1x5x640xf32, #tpu.memory_space<vmem>>, vector<1x5x640xf32>
    %1 = vector.shape_cast %0 : vector<1x5x640xf32> to vector<5x640xf32>
    %c0_2 = arith.constant 0 : index
    %c0_3 = arith.constant 0 : index
    %2 = vector.load %arg2[%c0_2, %c0_3] : memref<640x32xf32, #tpu.memory_space<vmem>>, vector<640x32xf32>
    %cst = arith.constant dense<0.000000e+00> : vector<5x32xf32>
    %3 = tpu.matmul %1, %2, %cst {dimension_numbers = #tpu.dot_dimension_numbers<[1], [0], [0], [1], [0, 0, 1, 1], [], []>} : vector<5x640xf32>, vector<640x32xf32>, vector<5x32xf32> -> vector<5x32xf32>
    %c0_4 = arith.constant 0 : index
    %c0_5 = arith.constant 0 : index
    %4 = vector.load %arg3[%c0_4, %c0_5] : memref<5x32xf32, #tpu.memory_space<vmem>>, vector<5x32xf32>
    %5 = arith.addf %3, %4 : vector<5x32xf32>
    %c0_6 = arith.constant 0 : index
    %c0_7 = arith.constant 0 : index
    %c0_8 = arith.constant 0 : index
    %6 = vector.load %arg4[%c0_6, %c0_7, %c0_8] : memref<2x8x32xf32, #tpu.memory_space<vmem>>, vector<1x8x32xf32>
    %7 = vector.shape_cast %6 : vector<1x8x32xf32> to vector<8x32xf32>
    %8 = vector.extract_strided_slice %7 {offsets = [0, 0], sizes = [1, 32], strides = [1, 1]} : vector<8x32xf32> to vector<1x32xf32>
    %9 = vector.extract_strided_slice %7 {offsets = [1, 0], sizes = [1, 32], strides = [1, 1]} : vector<8x32xf32> to vector<1x32xf32>
    %10 = vector.extract_strided_slice %7 {offsets = [2, 0], sizes = [1, 32], strides = [1, 1]} : vector<8x32xf32> to vector<1x32xf32>
    %11 = vector.extract_strided_slice %7 {offsets = [3, 0], sizes = [1, 32], strides = [1, 1]} : vector<8x32xf32> to vector<1x32xf32>
    %12 = vector.extract_strided_slice %7 {offsets = [4, 0], sizes = [1, 32], strides = [1, 1]} : vector<8x32xf32> to vector<1x32xf32>
    %13 = vector.extract_strided_slice %7 {offsets = [5, 0], sizes = [1, 32], strides = [1, 1]} : vector<8x32xf32> to vector<1x32xf32>
    %14 = vector.extract_strided_slice %7 {offsets = [6, 0], sizes = [1, 32], strides = [1, 1]} : vector<8x32xf32> to vector<1x32xf32>
    %15 = vector.extract_strided_slice %7 {offsets = [7, 0], sizes = [1, 32], strides = [1, 1]} : vector<8x32xf32> to vector<1x32xf32>
    %c0_9 = arith.constant 0 : index
    %c0_10 = arith.constant 0 : index
    %c0_11 = arith.constant 0 : index
    %16 = vector.load %arg5[%c0_9, %c0_10, %c0_11] : memref<2x32x96xf32, #tpu.memory_space<vmem>>, vector<1x32x96xf32>
    %17 = vector.shape_cast %16 : vector<1x32x96xf32> to vector<32x96xf32>
    %c0_12 = arith.constant 0 : index
    %c0_13 = arith.constant 0 : index
    %c0_14 = arith.constant 0 : index
    %18 = vector.load %arg7[%c0_12, %c0_13, %c0_14] : memref<2x32x32xf32, #tpu.memory_space<vmem>>, vector<1x32x32xf32>
    %19 = vector.shape_cast %18 : vector<1x32x32xf32> to vector<32x32xf32>
    %cst_15 = arith.constant dense<0.000000e+00> : vector<5xf32>
    %20 = vector.multi_reduction <add>, %5, %cst_15 [1] : vector<5x32xf32> to vector<5xf32>
    %21 = vector.shape_cast %20 : vector<5xf32> to vector<5x1xf32>
    %cst_16 = arith.constant 3.200000e+01 : f32
    %22 = vector.broadcast %cst_16 : f32 to vector<5x1xf32>
    %23 = arith.divf %21, %22 : vector<5x1xf32>
    %24 = vector.broadcast %23 : vector<5x1xf32> to vector<5x32xf32>
    %25 = arith.subf %5, %24 : vector<5x32xf32>
    %26 = arith.mulf %25, %25 : vector<5x32xf32>
    %cst_17 = arith.constant dense<0.000000e+00> : vector<5xf32>
    %27 = vector.multi_reduction <add>, %26, %cst_17 [1] : vector<5x32xf32> to vector<5xf32>
    %28 = vector.shape_cast %27 : vector<5xf32> to vector<5x1xf32>
    %cst_18 = arith.constant 3.200000e+01 : f32
    %29 = vector.broadcast %cst_18 : f32 to vector<5x1xf32>
    %30 = arith.divf %28, %29 : vector<5x1xf32>
    %cst_19 = arith.constant 9.99999997E-7 : f32
    %31 = vector.broadcast %cst_19 : f32 to vector<5x1xf32>
    %32 = arith.addf %30, %31 : vector<5x1xf32>
    %33 = math.rsqrt %32 : vector<5x1xf32>
    %34 = vector.broadcast %33 : vector<5x1xf32> to vector<5x32xf32>
    %35 = arith.mulf %25, %34 : vector<5x32xf32>
    %36 = vector.broadcast %8 : vector<1x32xf32> to vector<5x32xf32>
    %37 = arith.mulf %35, %36 : vector<5x32xf32>
    %38 = vector.broadcast %9 : vector<1x32xf32> to vector<5x32xf32>
    %39 = arith.addf %37, %38 : vector<5x32xf32>
    %cst_20 = arith.constant dense<0.000000e+00> : vector<5x96xf32>
    %40 = tpu.matmul %39, %17, %cst_20 {dimension_numbers = #tpu.dot_dimension_numbers<[1], [0], [0], [1], [0, 0, 1, 1], [], []>} : vector<5x32xf32>, vector<32x96xf32>, vector<5x96xf32> -> vector<5x96xf32>
    %c0_21 = arith.constant 0 : index
    %c0_22 = arith.constant 0 : index
    %c0_23 = arith.constant 0 : index
    %41 = vector.load %arg6[%c0_21, %c0_22, %c0_23] : memref<2x1x96xf32, #tpu.memory_space<vmem>>, vector<1x1x96xf32>
    %42 = vector.shape_cast %41 : vector<1x1x96xf32> to vector<1x96xf32>
    %43 = vector.broadcast %42 : vector<1x96xf32> to vector<5x96xf32>
    %44 = arith.addf %40, %43 : vector<5x96xf32>
    %45 = vector.extract_strided_slice %44 {offsets = [0, 0], sizes = [5, 16], strides = [1, 1]} : vector<5x96xf32> to vector<5x16xf32>
    %46 = vector.extract_strided_slice %44 {offsets = [0, 32], sizes = [5, 16], strides = [1, 1]} : vector<5x96xf32> to vector<5x16xf32>
    %47 = vector.extract_strided_slice %44 {offsets = [0, 64], sizes = [5, 16], strides = [1, 1]} : vector<5x96xf32> to vector<5x16xf32>
    %48 = tpu.transpose %46, [1, 0] : vector<5x16xf32> -> vector<16x5xf32>
    %cst_24 = arith.constant dense<0.000000e+00> : vector<5x5xf32>
    %49 = tpu.matmul %45, %48, %cst_24 {dimension_numbers = #tpu.dot_dimension_numbers<[1], [0], [0], [1], [0, 0, 1, 1], [], []>} : vector<5x16xf32>, vector<16x5xf32>, vector<5x5xf32> -> vector<5x5xf32>
    %cst_25 = arith.constant 2.500000e-01 : f32
    %50 = vector.broadcast %cst_25 : f32 to vector<5x5xf32>
    %51 = arith.mulf %49, %50 : vector<5x5xf32>
    %cst_26 = arith.constant dense<0xFF800000> : vector<5xf32>
    %52 = vector.multi_reduction <maximumf>, %51, %cst_26 [1] : vector<5x5xf32> to vector<5xf32>
    %53 = vector.shape_cast %52 : vector<5xf32> to vector<5x1xf32>
    %54 = vector.broadcast %53 : vector<5x1xf32> to vector<5x5xf32>
    %55 = arith.subf %51, %54 : vector<5x5xf32>
    %56 = math.exp %55 : vector<5x5xf32>
    %cst_27 = arith.constant dense<0.000000e+00> : vector<5xf32>
    %57 = vector.multi_reduction <add>, %56, %cst_27 [1] : vector<5x5xf32> to vector<5xf32>
    %58 = vector.shape_cast %57 : vector<5xf32> to vector<5x1xf32>
    %59 = tpu.reciprocal %58 {approx = true} : vector<5x1xf32> -> vector<5x1xf32>
    %60 = vector.broadcast %59 : vector<5x1xf32> to vector<5x5xf32>
    %61 = arith.mulf %56, %60 : vector<5x5xf32>
    %cst_28 = arith.constant dense<0.000000e+00> : vector<5x16xf32>
    %62 = tpu.matmul %61, %47, %cst_28 {dimension_numbers = #tpu.dot_dimension_numbers<[1], [0], [0], [1], [0, 0, 1, 1], [], []>} : vector<5x5xf32>, vector<5x16xf32>, vector<5x16xf32> -> vector<5x16xf32>
    %63 = vector.extract_strided_slice %19 {offsets = [0, 0], sizes = [16, 32], strides = [1, 1]} : vector<32x32xf32> to vector<16x32xf32>
    %cst_29 = arith.constant dense<0.000000e+00> : vector<5x32xf32>
    %64 = tpu.matmul %62, %63, %cst_29 {dimension_numbers = #tpu.dot_dimension_numbers<[1], [0], [0], [1], [0, 0, 1, 1], [], []>} : vector<5x16xf32>, vector<16x32xf32>, vector<5x32xf32> -> vector<5x32xf32>
    %65 = vector.extract_strided_slice %44 {offsets = [0, 16], sizes = [5, 16], strides = [1, 1]} : vector<5x96xf32> to vector<5x16xf32>
    %66 = vector.extract_strided_slice %44 {offsets = [0, 48], sizes = [5, 16], strides = [1, 1]} : vector<5x96xf32> to vector<5x16xf32>
    %67 = vector.extract_strided_slice %44 {offsets = [0, 80], sizes = [5, 16], strides = [1, 1]} : vector<5x96xf32> to vector<5x16xf32>
    %68 = tpu.transpose %66, [1, 0] : vector<5x16xf32> -> vector<16x5xf32>
    %cst_30 = arith.constant dense<0.000000e+00> : vector<5x5xf32>
    %69 = tpu.matmul %65, %68, %cst_30 {dimension_numbers = #tpu.dot_dimension_numbers<[1], [0], [0], [1], [0, 0, 1, 1], [], []>} : vector<5x16xf32>, vector<16x5xf32>, vector<5x5xf32> -> vector<5x5xf32>
    %cst_31 = arith.constant 2.500000e-01 : f32
    %70 = vector.broadcast %cst_31 : f32 to vector<5x5xf32>
    %71 = arith.mulf %69, %70 : vector<5x5xf32>
    %cst_32 = arith.constant dense<0xFF800000> : vector<5xf32>
    %72 = vector.multi_reduction <maximumf>, %71, %cst_32 [1] : vector<5x5xf32> to vector<5xf32>
    %73 = vector.shape_cast %72 : vector<5xf32> to vector<5x1xf32>
    %74 = vector.broadcast %73 : vector<5x1xf32> to vector<5x5xf32>
    %75 = arith.subf %71, %74 : vector<5x5xf32>
    %76 = math.exp %75 : vector<5x5xf32>
    %cst_33 = arith.constant dense<0.000000e+00> : vector<5xf32>
    %77 = vector.multi_reduction <add>, %76, %cst_33 [1] : vector<5x5xf32> to vector<5xf32>
    %78 = vector.shape_cast %77 : vector<5xf32> to vector<5x1xf32>
    %79 = tpu.reciprocal %78 {approx = true} : vector<5x1xf32> -> vector<5x1xf32>
    %80 = vector.broadcast %79 : vector<5x1xf32> to vector<5x5xf32>
    %81 = arith.mulf %76, %80 : vector<5x5xf32>
    %cst_34 = arith.constant dense<0.000000e+00> : vector<5x16xf32>
    %82 = tpu.matmul %81, %67, %cst_34 {dimension_numbers = #tpu.dot_dimension_numbers<[1], [0], [0], [1], [0, 0, 1, 1], [], []>} : vector<5x5xf32>, vector<5x16xf32>, vector<5x16xf32> -> vector<5x16xf32>
    %83 = vector.extract_strided_slice %19 {offsets = [16, 0], sizes = [16, 32], strides = [1, 1]} : vector<32x32xf32> to vector<16x32xf32>
    %cst_35 = arith.constant dense<0.000000e+00> : vector<5x32xf32>
    %84 = tpu.matmul %82, %83, %cst_35 {dimension_numbers = #tpu.dot_dimension_numbers<[1], [0], [0], [1], [0, 0, 1, 1], [], []>} : vector<5x16xf32>, vector<16x32xf32>, vector<5x32xf32> -> vector<5x32xf32>
    %85 = arith.addf %64, %84 : vector<5x32xf32>
    %86 = vector.broadcast %10 : vector<1x32xf32> to vector<5x32xf32>
    %87 = arith.addf %85, %86 : vector<5x32xf32>
    %88 = vector.broadcast %11 : vector<1x32xf32> to vector<5x32xf32>
    %89 = arith.mulf %88, %87 : vector<5x32xf32>
    %90 = arith.addf %5, %89 : vector<5x32xf32>
    %cst_36 = arith.constant dense<0.000000e+00> : vector<5xf32>
    %91 = vector.multi_reduction <add>, %90, %cst_36 [1] : vector<5x32xf32> to vector<5xf32>
    %92 = vector.shape_cast %91 : vector<5xf32> to vector<5x1xf32>
    %cst_37 = arith.constant 3.200000e+01 : f32
    %93 = vector.broadcast %cst_37 : f32 to vector<5x1xf32>
    %94 = arith.divf %92, %93 : vector<5x1xf32>
    %95 = vector.broadcast %94 : vector<5x1xf32> to vector<5x32xf32>
    %96 = arith.subf %90, %95 : vector<5x32xf32>
    %97 = arith.mulf %96, %96 : vector<5x32xf32>
    %cst_38 = arith.constant dense<0.000000e+00> : vector<5xf32>
    %98 = vector.multi_reduction <add>, %97, %cst_38 [1] : vector<5x32xf32> to vector<5xf32>
    %99 = vector.shape_cast %98 : vector<5xf32> to vector<5x1xf32>
    %cst_39 = arith.constant 3.200000e+01 : f32
    %100 = vector.broadcast %cst_39 : f32 to vector<5x1xf32>
    %101 = arith.divf %99, %100 : vector<5x1xf32>
    %cst_40 = arith.constant 9.99999997E-7 : f32
    %102 = vector.broadcast %cst_40 : f32 to vector<5x1xf32>
    %103 = arith.addf %101, %102 : vector<5x1xf32>
    %104 = math.rsqrt %103 : vector<5x1xf32>
    %105 = vector.broadcast %104 : vector<5x1xf32> to vector<5x32xf32>
    %106 = arith.mulf %96, %105 : vector<5x32xf32>
    %107 = vector.broadcast %12 : vector<1x32xf32> to vector<5x32xf32>
    %108 = arith.mulf %106, %107 : vector<5x32xf32>
    %109 = vector.broadcast %13 : vector<1x32xf32> to vector<5x32xf32>
    %110 = arith.addf %108, %109 : vector<5x32xf32>
    %c0_41 = arith.constant 0 : index
    %c0_42 = arith.constant 0 : index
    %c0_43 = arith.constant 0 : index
    %111 = vector.load %arg8[%c0_41, %c0_42, %c0_43] : memref<2x32x128xf32, #tpu.memory_space<vmem>>, vector<1x32x128xf32>
    %112 = vector.shape_cast %111 : vector<1x32x128xf32> to vector<32x128xf32>
    %cst_44 = arith.constant dense<0.000000e+00> : vector<5x128xf32>
    %113 = tpu.matmul %110, %112, %cst_44 {dimension_numbers = #tpu.dot_dimension_numbers<[1], [0], [0], [1], [0, 0, 1, 1], [], []>} : vector<5x32xf32>, vector<32x128xf32>, vector<5x128xf32> -> vector<5x128xf32>
    %c0_45 = arith.constant 0 : index
    %c0_46 = arith.constant 0 : index
    %c0_47 = arith.constant 0 : index
    %114 = vector.load %arg9[%c0_45, %c0_46, %c0_47] : memref<2x1x128xf32, #tpu.memory_space<vmem>>, vector<1x1x128xf32>
    %115 = vector.shape_cast %114 : vector<1x1x128xf32> to vector<1x128xf32>
    %116 = vector.broadcast %115 : vector<1x128xf32> to vector<5x128xf32>
    %117 = arith.addf %113, %116 : vector<5x128xf32>
    %118 = arith.mulf %117, %117 : vector<5x128xf32>
    %119 = arith.mulf %117, %118 : vector<5x128xf32>
    %cst_48 = arith.constant 4.471500e-02 : f32
    %120 = vector.broadcast %cst_48 : f32 to vector<5x128xf32>
    %121 = arith.mulf %120, %119 : vector<5x128xf32>
    %122 = arith.addf %117, %121 : vector<5x128xf32>
    %cst_49 = arith.constant 0.797884583 : f32
    %123 = vector.broadcast %cst_49 : f32 to vector<5x128xf32>
    %124 = arith.mulf %123, %122 : vector<5x128xf32>
    %125 = math.tanh %124 : vector<5x128xf32>
    %cst_50 = arith.constant 1.000000e+00 : f32
    %126 = vector.broadcast %cst_50 : f32 to vector<5x128xf32>
    %127 = arith.addf %126, %125 : vector<5x128xf32>
    %cst_51 = arith.constant 5.000000e-01 : f32
    %128 = vector.broadcast %cst_51 : f32 to vector<5x128xf32>
    %129 = arith.mulf %128, %127 : vector<5x128xf32>
    %130 = arith.mulf %117, %129 : vector<5x128xf32>
    %c0_52 = arith.constant 0 : index
    %c0_53 = arith.constant 0 : index
    %c0_54 = arith.constant 0 : index
    %131 = vector.load %arg10[%c0_52, %c0_53, %c0_54] : memref<2x128x32xf32, #tpu.memory_space<vmem>>, vector<1x128x32xf32>
    %132 = vector.shape_cast %131 : vector<1x128x32xf32> to vector<128x32xf32>
    %cst_55 = arith.constant dense<0.000000e+00> : vector<5x32xf32>
    %133 = tpu.matmul %130, %132, %cst_55 {dimension_numbers = #tpu.dot_dimension_numbers<[1], [0], [0], [1], [0, 0, 1, 1], [], []>} : vector<5x128xf32>, vector<128x32xf32>, vector<5x32xf32> -> vector<5x32xf32>
    %134 = vector.broadcast %14 : vector<1x32xf32> to vector<5x32xf32>
    %135 = arith.addf %133, %134 : vector<5x32xf32>
    %136 = vector.broadcast %15 : vector<1x32xf32> to vector<5x32xf32>
    %137 = arith.mulf %136, %135 : vector<5x32xf32>
    %138 = arith.addf %90, %137 : vector<5x32xf32>
    %c1 = arith.constant 1 : index
    %c0_56 = arith.constant 0 : index
    %c0_57 = arith.constant 0 : index
    %139 = vector.load %arg4[%c1, %c0_56, %c0_57] : memref<2x8x32xf32, #tpu.memory_space<vmem>>, vector<1x8x32xf32>
    %140 = vector.shape_cast %139 : vector<1x8x32xf32> to vector<8x32xf32>
    %141 = vector.extract_strided_slice %140 {offsets = [0, 0], sizes = [1, 32], strides = [1, 1]} : vector<8x32xf32> to vector<1x32xf32>
    %142 = vector.extract_strided_slice %140 {offsets = [1, 0], sizes = [1, 32], strides = [1, 1]} : vector<8x32xf32> to vector<1x32xf32>
    %143 = vector.extract_strided_slice %140 {offsets = [2, 0], sizes = [1, 32], strides = [1, 1]} : vector<8x32xf32> to vector<1x32xf32>
    %144 = vector.extract_strided_slice %140 {offsets = [3, 0], sizes = [1, 32], strides = [1, 1]} : vector<8x32xf32> to vector<1x32xf32>
    %145 = vector.extract_strided_slice %140 {offsets = [4, 0], sizes = [1, 32], strides = [1, 1]} : vector<8x32xf32> to vector<1x32xf32>
    %146 = vector.extract_strided_slice %140 {offsets = [5, 0], sizes = [1, 32], strides = [1, 1]} : vector<8x32xf32> to vector<1x32xf32>
    %147 = vector.extract_strided_slice %140 {offsets = [6, 0], sizes = [1, 32], strides = [1, 1]} : vector<8x32xf32> to vector<1x32xf32>
    %148 = vector.extract_strided_slice %140 {offsets = [7, 0], sizes = [1, 32], strides = [1, 1]} : vector<8x32xf32> to vector<1x32xf32>
    %c1_58 = arith.constant 1 : index
    %c0_59 = arith.constant 0 : index
    %c0_60 = arith.constant 0 : index
    %149 = vector.load %arg5[%c1_58, %c0_59, %c0_60] : memref<2x32x96xf32, #tpu.memory_space<vmem>>, vector<1x32x96xf32>
    %150 = vector.shape_cast %149 : vector<1x32x96xf32> to vector<32x96xf32>
    %c1_61 = arith.constant 1 : index
    %c0_62 = arith.constant 0 : index
    %c0_63 = arith.constant 0 : index
    %151 = vector.load %arg7[%c1_61, %c0_62, %c0_63] : memref<2x32x32xf32, #tpu.memory_space<vmem>>, vector<1x32x32xf32>
    %152 = vector.shape_cast %151 : vector<1x32x32xf32> to vector<32x32xf32>
    %cst_64 = arith.constant dense<0.000000e+00> : vector<5xf32>
    %153 = vector.multi_reduction <add>, %138, %cst_64 [1] : vector<5x32xf32> to vector<5xf32>
    %154 = vector.shape_cast %153 : vector<5xf32> to vector<5x1xf32>
    %cst_65 = arith.constant 3.200000e+01 : f32
    %155 = vector.broadcast %cst_65 : f32 to vector<5x1xf32>
    %156 = arith.divf %154, %155 : vector<5x1xf32>
    %157 = vector.broadcast %156 : vector<5x1xf32> to vector<5x32xf32>
    %158 = arith.subf %138, %157 : vector<5x32xf32>
    %159 = arith.mulf %158, %158 : vector<5x32xf32>
    %cst_66 = arith.constant dense<0.000000e+00> : vector<5xf32>
    %160 = vector.multi_reduction <add>, %159, %cst_66 [1] : vector<5x32xf32> to vector<5xf32>
    %161 = vector.shape_cast %160 : vector<5xf32> to vector<5x1xf32>
    %cst_67 = arith.constant 3.200000e+01 : f32
    %162 = vector.broadcast %cst_67 : f32 to vector<5x1xf32>
    %163 = arith.divf %161, %162 : vector<5x1xf32>
    %cst_68 = arith.constant 9.99999997E-7 : f32
    %164 = vector.broadcast %cst_68 : f32 to vector<5x1xf32>
    %165 = arith.addf %163, %164 : vector<5x1xf32>
    %166 = math.rsqrt %165 : vector<5x1xf32>
    %167 = vector.broadcast %166 : vector<5x1xf32> to vector<5x32xf32>
    %168 = arith.mulf %158, %167 : vector<5x32xf32>
    %169 = vector.broadcast %141 : vector<1x32xf32> to vector<5x32xf32>
    %170 = arith.mulf %168, %169 : vector<5x32xf32>
    %171 = vector.broadcast %142 : vector<1x32xf32> to vector<5x32xf32>
    %172 = arith.addf %170, %171 : vector<5x32xf32>
    %cst_69 = arith.constant dense<0.000000e+00> : vector<5x96xf32>
    %173 = tpu.matmul %172, %150, %cst_69 {dimension_numbers = #tpu.dot_dimension_numbers<[1], [0], [0], [1], [0, 0, 1, 1], [], []>} : vector<5x32xf32>, vector<32x96xf32>, vector<5x96xf32> -> vector<5x96xf32>
    %c1_70 = arith.constant 1 : index
    %c0_71 = arith.constant 0 : index
    %c0_72 = arith.constant 0 : index
    %174 = vector.load %arg6[%c1_70, %c0_71, %c0_72] : memref<2x1x96xf32, #tpu.memory_space<vmem>>, vector<1x1x96xf32>
    %175 = vector.shape_cast %174 : vector<1x1x96xf32> to vector<1x96xf32>
    %176 = vector.broadcast %175 : vector<1x96xf32> to vector<5x96xf32>
    %177 = arith.addf %173, %176 : vector<5x96xf32>
    %178 = vector.extract_strided_slice %177 {offsets = [0, 0], sizes = [5, 16], strides = [1, 1]} : vector<5x96xf32> to vector<5x16xf32>
    %179 = vector.extract_strided_slice %177 {offsets = [0, 32], sizes = [5, 16], strides = [1, 1]} : vector<5x96xf32> to vector<5x16xf32>
    %180 = vector.extract_strided_slice %177 {offsets = [0, 64], sizes = [5, 16], strides = [1, 1]} : vector<5x96xf32> to vector<5x16xf32>
    %181 = tpu.transpose %179, [1, 0] : vector<5x16xf32> -> vector<16x5xf32>
    %cst_73 = arith.constant dense<0.000000e+00> : vector<5x5xf32>
    %182 = tpu.matmul %178, %181, %cst_73 {dimension_numbers = #tpu.dot_dimension_numbers<[1], [0], [0], [1], [0, 0, 1, 1], [], []>} : vector<5x16xf32>, vector<16x5xf32>, vector<5x5xf32> -> vector<5x5xf32>
    %cst_74 = arith.constant 2.500000e-01 : f32
    %183 = vector.broadcast %cst_74 : f32 to vector<5x5xf32>
    %184 = arith.mulf %182, %183 : vector<5x5xf32>
    %cst_75 = arith.constant dense<0xFF800000> : vector<5xf32>
    %185 = vector.multi_reduction <maximumf>, %184, %cst_75 [1] : vector<5x5xf32> to vector<5xf32>
    %186 = vector.shape_cast %185 : vector<5xf32> to vector<5x1xf32>
    %187 = vector.broadcast %186 : vector<5x1xf32> to vector<5x5xf32>
    %188 = arith.subf %184, %187 : vector<5x5xf32>
    %189 = math.exp %188 : vector<5x5xf32>
    %cst_76 = arith.constant dense<0.000000e+00> : vector<5xf32>
    %190 = vector.multi_reduction <add>, %189, %cst_76 [1] : vector<5x5xf32> to vector<5xf32>
    %191 = vector.shape_cast %190 : vector<5xf32> to vector<5x1xf32>
    %192 = tpu.reciprocal %191 {approx = true} : vector<5x1xf32> -> vector<5x1xf32>
    %193 = vector.broadcast %192 : vector<5x1xf32> to vector<5x5xf32>
    %194 = arith.mulf %189, %193 : vector<5x5xf32>
    %cst_77 = arith.constant dense<0.000000e+00> : vector<5x16xf32>
    %195 = tpu.matmul %194, %180, %cst_77 {dimension_numbers = #tpu.dot_dimension_numbers<[1], [0], [0], [1], [0, 0, 1, 1], [], []>} : vector<5x5xf32>, vector<5x16xf32>, vector<5x16xf32> -> vector<5x16xf32>
    %196 = vector.extract_strided_slice %152 {offsets = [0, 0], sizes = [16, 32], strides = [1, 1]} : vector<32x32xf32> to vector<16x32xf32>
    %cst_78 = arith.constant dense<0.000000e+00> : vector<5x32xf32>
    %197 = tpu.matmul %195, %196, %cst_78 {dimension_numbers = #tpu.dot_dimension_numbers<[1], [0], [0], [1], [0, 0, 1, 1], [], []>} : vector<5x16xf32>, vector<16x32xf32>, vector<5x32xf32> -> vector<5x32xf32>
    %198 = vector.extract_strided_slice %177 {offsets = [0, 16], sizes = [5, 16], strides = [1, 1]} : vector<5x96xf32> to vector<5x16xf32>
    %199 = vector.extract_strided_slice %177 {offsets = [0, 48], sizes = [5, 16], strides = [1, 1]} : vector<5x96xf32> to vector<5x16xf32>
    %200 = vector.extract_strided_slice %177 {offsets = [0, 80], sizes = [5, 16], strides = [1, 1]} : vector<5x96xf32> to vector<5x16xf32>
    %201 = tpu.transpose %199, [1, 0] : vector<5x16xf32> -> vector<16x5xf32>
    %cst_79 = arith.constant dense<0.000000e+00> : vector<5x5xf32>
    %202 = tpu.matmul %198, %201, %cst_79 {dimension_numbers = #tpu.dot_dimension_numbers<[1], [0], [0], [1], [0, 0, 1, 1], [], []>} : vector<5x16xf32>, vector<16x5xf32>, vector<5x5xf32> -> vector<5x5xf32>
    %cst_80 = arith.constant 2.500000e-01 : f32
    %203 = vector.broadcast %cst_80 : f32 to vector<5x5xf32>
    %204 = arith.mulf %202, %203 : vector<5x5xf32>
    %cst_81 = arith.constant dense<0xFF800000> : vector<5xf32>
    %205 = vector.multi_reduction <maximumf>, %204, %cst_81 [1] : vector<5x5xf32> to vector<5xf32>
    %206 = vector.shape_cast %205 : vector<5xf32> to vector<5x1xf32>
    %207 = vector.broadcast %206 : vector<5x1xf32> to vector<5x5xf32>
    %208 = arith.subf %204, %207 : vector<5x5xf32>
    %209 = math.exp %208 : vector<5x5xf32>
    %cst_82 = arith.constant dense<0.000000e+00> : vector<5xf32>
    %210 = vector.multi_reduction <add>, %209, %cst_82 [1] : vector<5x5xf32> to vector<5xf32>
    %211 = vector.shape_cast %210 : vector<5xf32> to vector<5x1xf32>
    %212 = tpu.reciprocal %211 {approx = true} : vector<5x1xf32> -> vector<5x1xf32>
    %213 = vector.broadcast %212 : vector<5x1xf32> to vector<5x5xf32>
    %214 = arith.mulf %209, %213 : vector<5x5xf32>
    %cst_83 = arith.constant dense<0.000000e+00> : vector<5x16xf32>
    %215 = tpu.matmul %214, %200, %cst_83 {dimension_numbers = #tpu.dot_dimension_numbers<[1], [0], [0], [1], [0, 0, 1, 1], [], []>} : vector<5x5xf32>, vector<5x16xf32>, vector<5x16xf32> -> vector<5x16xf32>
    %216 = vector.extract_strided_slice %152 {offsets = [16, 0], sizes = [16, 32], strides = [1, 1]} : vector<32x32xf32> to vector<16x32xf32>
    %cst_84 = arith.constant dense<0.000000e+00> : vector<5x32xf32>
    %217 = tpu.matmul %215, %216, %cst_84 {dimension_numbers = #tpu.dot_dimension_numbers<[1], [0], [0], [1], [0, 0, 1, 1], [], []>} : vector<5x16xf32>, vector<16x32xf32>, vector<5x32xf32> -> vector<5x32xf32>
    %218 = arith.addf %197, %217 : vector<5x32xf32>
    %219 = vector.broadcast %143 : vector<1x32xf32> to vector<5x32xf32>
    %220 = arith.addf %218, %219 : vector<5x32xf32>
    %221 = vector.broadcast %144 : vector<1x32xf32> to vector<5x32xf32>
    %222 = arith.mulf %221, %220 : vector<5x32xf32>
    %223 = arith.addf %138, %222 : vector<5x32xf32>
    %cst_85 = arith.constant dense<0.000000e+00> : vector<5xf32>
    %224 = vector.multi_reduction <add>, %223, %cst_85 [1] : vector<5x32xf32> to vector<5xf32>
    %225 = vector.shape_cast %224 : vector<5xf32> to vector<5x1xf32>
    %cst_86 = arith.constant 3.200000e+01 : f32
    %226 = vector.broadcast %cst_86 : f32 to vector<5x1xf32>
    %227 = arith.divf %225, %226 : vector<5x1xf32>
    %228 = vector.broadcast %227 : vector<5x1xf32> to vector<5x32xf32>
    %229 = arith.subf %223, %228 : vector<5x32xf32>
    %230 = arith.mulf %229, %229 : vector<5x32xf32>
    %cst_87 = arith.constant dense<0.000000e+00> : vector<5xf32>
    %231 = vector.multi_reduction <add>, %230, %cst_87 [1] : vector<5x32xf32> to vector<5xf32>
    %232 = vector.shape_cast %231 : vector<5xf32> to vector<5x1xf32>
    %cst_88 = arith.constant 3.200000e+01 : f32
    %233 = vector.broadcast %cst_88 : f32 to vector<5x1xf32>
    %234 = arith.divf %232, %233 : vector<5x1xf32>
    %cst_89 = arith.constant 9.99999997E-7 : f32
    %235 = vector.broadcast %cst_89 : f32 to vector<5x1xf32>
    %236 = arith.addf %234, %235 : vector<5x1xf32>
    %237 = math.rsqrt %236 : vector<5x1xf32>
    %238 = vector.broadcast %237 : vector<5x1xf32> to vector<5x32xf32>
    %239 = arith.mulf %229, %238 : vector<5x32xf32>
    %240 = vector.broadcast %145 : vector<1x32xf32> to vector<5x32xf32>
    %241 = arith.mulf %239, %240 : vector<5x32xf32>
    %242 = vector.broadcast %146 : vector<1x32xf32> to vector<5x32xf32>
    %243 = arith.addf %241, %242 : vector<5x32xf32>
    %c1_90 = arith.constant 1 : index
    %c0_91 = arith.constant 0 : index
    %c0_92 = arith.constant 0 : index
    %244 = vector.load %arg8[%c1_90, %c0_91, %c0_92] : memref<2x32x128xf32, #tpu.memory_space<vmem>>, vector<1x32x128xf32>
    %245 = vector.shape_cast %244 : vector<1x32x128xf32> to vector<32x128xf32>
    %cst_93 = arith.constant dense<0.000000e+00> : vector<5x128xf32>
    %246 = tpu.matmul %243, %245, %cst_93 {dimension_numbers = #tpu.dot_dimension_numbers<[1], [0], [0], [1], [0, 0, 1, 1], [], []>} : vector<5x32xf32>, vector<32x128xf32>, vector<5x128xf32> -> vector<5x128xf32>
    %c1_94 = arith.constant 1 : index
    %c0_95 = arith.constant 0 : index
    %c0_96 = arith.constant 0 : index
    %247 = vector.load %arg9[%c1_94, %c0_95, %c0_96] : memref<2x1x128xf32, #tpu.memory_space<vmem>>, vector<1x1x128xf32>
    %248 = vector.shape_cast %247 : vector<1x1x128xf32> to vector<1x128xf32>
    %249 = vector.broadcast %248 : vector<1x128xf32> to vector<5x128xf32>
    %250 = arith.addf %246, %249 : vector<5x128xf32>
    %251 = arith.mulf %250, %250 : vector<5x128xf32>
    %252 = arith.mulf %250, %251 : vector<5x128xf32>
    %cst_97 = arith.constant 4.471500e-02 : f32
    %253 = vector.broadcast %cst_97 : f32 to vector<5x128xf32>
    %254 = arith.mulf %253, %252 : vector<5x128xf32>
    %255 = arith.addf %250, %254 : vector<5x128xf32>
    %cst_98 = arith.constant 0.797884583 : f32
    %256 = vector.broadcast %cst_98 : f32 to vector<5x128xf32>
    %257 = arith.mulf %256, %255 : vector<5x128xf32>
    %258 = math.tanh %257 : vector<5x128xf32>
    %cst_99 = arith.constant 1.000000e+00 : f32
    %259 = vector.broadcast %cst_99 : f32 to vector<5x128xf32>
    %260 = arith.addf %259, %258 : vector<5x128xf32>
    %cst_100 = arith.constant 5.000000e-01 : f32
    %261 = vector.broadcast %cst_100 : f32 to vector<5x128xf32>
    %262 = arith.mulf %261, %260 : vector<5x128xf32>
    %263 = arith.mulf %250, %262 : vector<5x128xf32>
    %c1_101 = arith.constant 1 : index
    %c0_102 = arith.constant 0 : index
    %c0_103 = arith.constant 0 : index
    %264 = vector.load %arg10[%c1_101, %c0_102, %c0_103] : memref<2x128x32xf32, #tpu.memory_space<vmem>>, vector<1x128x32xf32>
    %265 = vector.shape_cast %264 : vector<1x128x32xf32> to vector<128x32xf32>
    %cst_104 = arith.constant dense<0.000000e+00> : vector<5x32xf32>
    %266 = tpu.matmul %263, %265, %cst_104 {dimension_numbers = #tpu.dot_dimension_numbers<[1], [0], [0], [1], [0, 0, 1, 1], [], []>} : vector<5x128xf32>, vector<128x32xf32>, vector<5x32xf32> -> vector<5x32xf32>
    %267 = vector.broadcast %147 : vector<1x32xf32> to vector<5x32xf32>
    %268 = arith.addf %266, %267 : vector<5x32xf32>
    %269 = vector.broadcast %148 : vector<1x32xf32> to vector<5x32xf32>
    %270 = arith.mulf %269, %268 : vector<5x32xf32>
    %271 = arith.addf %223, %270 : vector<5x32xf32>
    %272 = vector.extract_strided_slice %271 {offsets = [0, 0], sizes = [1, 32], strides = [1, 1]} : vector<5x32xf32> to vector<1x32xf32>
    %c0_105 = arith.constant 0 : index
    %c0_106 = arith.constant 0 : index
    %273 = vector.load %arg11[%c0_105, %c0_106] : memref<2x32xf32, #tpu.memory_space<vmem>>, vector<1x32xf32>
    %c1_107 = arith.constant 1 : index
    %c0_108 = arith.constant 0 : index
    %274 = vector.load %arg11[%c1_107, %c0_108] : memref<2x32xf32, #tpu.memory_space<vmem>>, vector<1x32xf32>
    %cst_109 = arith.constant dense<0.000000e+00> : vector<1xf32>
    %275 = vector.multi_reduction <add>, %272, %cst_109 [1] : vector<1x32xf32> to vector<1xf32>
    %276 = vector.shape_cast %275 : vector<1xf32> to vector<1x1xf32>
    %cst_110 = arith.constant 3.200000e+01 : f32
    %277 = vector.broadcast %cst_110 : f32 to vector<1x1xf32>
    %278 = arith.divf %276, %277 : vector<1x1xf32>
    %279 = vector.broadcast %278 : vector<1x1xf32> to vector<1x32xf32>
    %280 = arith.subf %272, %279 : vector<1x32xf32>
    %281 = arith.mulf %280, %280 : vector<1x32xf32>
    %cst_111 = arith.constant dense<0.000000e+00> : vector<1xf32>
    %282 = vector.multi_reduction <add>, %281, %cst_111 [1] : vector<1x32xf32> to vector<1xf32>
    %283 = vector.shape_cast %282 : vector<1xf32> to vector<1x1xf32>
    %cst_112 = arith.constant 3.200000e+01 : f32
    %284 = vector.broadcast %cst_112 : f32 to vector<1x1xf32>
    %285 = arith.divf %283, %284 : vector<1x1xf32>
    %cst_113 = arith.constant 9.99999997E-7 : f32
    %286 = vector.broadcast %cst_113 : f32 to vector<1x1xf32>
    %287 = arith.addf %285, %286 : vector<1x1xf32>
    %288 = math.rsqrt %287 : vector<1x1xf32>
    %289 = vector.broadcast %288 : vector<1x1xf32> to vector<1x32xf32>
    %290 = arith.mulf %280, %289 : vector<1x32xf32>
    %291 = arith.mulf %290, %273 : vector<1x32xf32>
    %292 = arith.addf %291, %274 : vector<1x32xf32>
    %293 = arith.mulf %292, %292 : vector<1x32xf32>
    %cst_114 = arith.constant dense<0.000000e+00> : vector<1xf32>
    %294 = vector.multi_reduction <add>, %293, %cst_114 [1] : vector<1x32xf32> to vector<1xf32>
    %295 = vector.shape_cast %294 : vector<1xf32> to vector<1x1xf32>
    %cst_115 = arith.constant 1.000000e-24 : f32
    %296 = vector.broadcast %cst_115 : f32 to vector<1x1xf32>
    %297 = arith.maximumf %295, %296 : vector<1x1xf32>
    %298 = math.rsqrt %297 : vector<1x1xf32>
    %299 = vector.broadcast %298 : vector<1x1xf32> to vector<1x32xf32>
    %300 = arith.mulf %292, %299 : vector<1x32xf32>
    %c0_116 = arith.constant 0 : index
    %c0_117 = arith.constant 0 : index
    %c0_118 = arith.constant 0 : index
    %301 = vector.load %arg12[%c0_116, %c0_117, %c0_118] : memref<1x1x32xf32, #tpu.memory_space<vmem>>, vector<1x1x32xf32>
    %302 = vector.shape_cast %301 : vector<1x1x32xf32> to vector<1x32xf32>
    %303 = vector.shape_cast %300 : vector<1x32xf32> to vector<1x1x32xf32>
    tpu.vector_store %arg12[%c0_116, %c0_117, %c0_118], %303 {strides = array<i32>} : memref<1x1x32xf32, #tpu.memory_space<vmem>>, vector<1x1x32xf32>,
    return
  }
  func.func @transform_0(%arg0: i32) -> (i32, i32, i32) {
    %c0_i32 = arith.constant 0 : i32
    %c0_i32_0 = arith.constant 0 : i32
    %c0_i32_1 = arith.constant 0 : i32
    return %arg0, %c0_i32, %c0_i32_0 : i32, i32, i32
  }
  func.func @transform_1(%arg0: i32) -> (i32, i32) {
    %c0_i32 = arith.constant 0 : i32
    %c0_i32_0 = arith.constant 0 : i32
    %c0_i32_1 = arith.constant 0 : i32
    return %c0_i32, %c0_i32_0 : i32, i32
  }
  func.func @transform_2(%arg0: i32) -> (i32, i32) {
    %c0_i32 = arith.constant 0 : i32
    %c0_i32_0 = arith.constant 0 : i32
    %c0_i32_1 = arith.constant 0 : i32
    return %c0_i32, %c0_i32_0 : i32, i32
  }
  func.func @transform_3(%arg0: i32) -> (i32, i32, i32) {
    %c0_i32 = arith.constant 0 : i32
    %c0_i32_0 = arith.constant 0 : i32
    %c0_i32_1 = arith.constant 0 : i32
    %c0_i32_2 = arith.constant 0 : i32
    return %c0_i32, %c0_i32_0, %c0_i32_1 : i32, i32, i32
  }
  func.func @transform_4(%arg0: i32) -> (i32, i32, i32) {
    %c0_i32 = arith.constant 0 : i32
    %c0_i32_0 = arith.constant 0 : i32
    %c0_i32_1 = arith.constant 0 : i32
    %c0_i32_2 = arith.constant 0 : i32
    return %c0_i32, %c0_i32_0, %c0_i32_1 : i32, i32, i32
  }
  func.func @transform_5(%arg0: i32) -> (i32, i32, i32) {
    %c0_i32 = arith.constant 0 : i32
    %c0_i32_0 = arith.constant 0 : i32
    %c0_i32_1 = arith.constant 0 : i32
    %c0_i32_2 = arith.constant 0 : i32
    return %c0_i32, %c0_i32_0, %c0_i32_1 : i32, i32, i32
  }
  func.func @transform_6(%arg0: i32) -> (i32, i32, i32) {
    %c0_i32 = arith.constant 0 : i32
    %c0_i32_0 = arith.constant 0 : i32
    %c0_i32_1 = arith.constant 0 : i32
    %c0_i32_2 = arith.constant 0 : i32
    return %c0_i32, %c0_i32_0, %c0_i32_1 : i32, i32, i32
  }
  func.func @transform_7(%arg0: i32) -> (i32, i32, i32) {
    %c0_i32 = arith.constant 0 : i32
    %c0_i32_0 = arith.constant 0 : i32
    %c0_i32_1 = arith.constant 0 : i32
    %c0_i32_2 = arith.constant 0 : i32
    return %c0_i32, %c0_i32_0, %c0_i32_1 : i32, i32, i32
  }
  func.func @transform_8(%arg0: i32) -> (i32, i32, i32) {
    %c0_i32 = arith.constant 0 : i32
    %c0_i32_0 = arith.constant 0 : i32
    %c0_i32_1 = arith.constant 0 : i32
    %c0_i32_2 = arith.constant 0 : i32
    return %c0_i32, %c0_i32_0, %c0_i32_1 : i32, i32, i32
  }
  func.func @transform_9(%arg0: i32) -> (i32, i32, i32) {
    %c0_i32 = arith.constant 0 : i32
    %c0_i32_0 = arith.constant 0 : i32
    %c0_i32_1 = arith.constant 0 : i32
    %c0_i32_2 = arith.constant 0 : i32
    return %c0_i32, %c0_i32_0, %c0_i32_1 : i32, i32, i32
  }
  func.func @transform_10(%arg0: i32) -> (i32, i32) {
    %c0_i32 = arith.constant 0 : i32
    %c0_i32_0 = arith.constant 0 : i32
    %c0_i32_1 = arith.constant 0 : i32
    return %c0_i32, %c0_i32_0 : i32, i32
  }
  func.func @transform_11(%arg0: i32) -> (i32, i32, i32) {
    %c0_i32 = arith.constant 0 : i32
    %c0_i32_0 = arith.constant 0 : i32
    %c0_i32_1 = arith.constant 0 : i32
    return %arg0, %c0_i32, %c0_i32_0 : i32, i32, i32
  }
}

</mosaic_0001>

<bundles_post_ra>
// kernel: vit_wrapper_forward.1
= control target key start
LH: loop header
LB: loop body
LE: loop exit
PB: predicated region body
PF: predicated region fallthrough
CT: control target
= control target key end

     0   :  { %16 = vsyncpa [#allocation3], 0  ;;  %s4019_s0 = inlined_call_operand.vmem [shape: f32[2,5,640], index: 0, kind: input, shape index: {}]   ;;  %s4020_s1 = inlined_call_operand.vmem [shape: f32[640,32], index: 1, kind: input, shape index: {}]   ;;  %s4021_s2 = inlined_call_operand.vmem [shape: f32[5,32], index: 2, kind: input, shape index: {}]   ;;  %s4022_s3 = inlined_call_operand.vmem [shape: f32[2,8,32], index: 3, kind: input, shape index: {}]   ;;  %s4023_s4 = inlined_call_operand.vmem [shape: f32[2,32,96], index: 4, kind: input, shape index: {}]   ;;  %s4024_s5 = inlined_call_operand.vmem [shape: f32[2,1,96], index: 5, kind: input, shape index: {}]   ;;  %s4025_s6 = inlined_call_operand.vmem [shape: f32[2,32,32], index: 6, kind: input, shape index: {}]   ;;  %s4026_s7 = inlined_call_operand.vmem [shape: f32[2,32,128], index: 7, kind: input, shape index: {}]   ;;  %s4027_s8 = inlined_call_operand.vmem [shape: f32[2,1,128], index: 8, kind: input, shape index: {}]   ;;  %s4028_s9 = inlined_call_operand.vmem [shape: f32[2,128,32], index: 9, kind: input, shape index: {}]   ;;  %s4029_s10 = inlined_call_operand.vmem [shape: f32[2,32], index: 10, kind: input, shape index: {}]   ;;  %s4030_s11 = inlined_call_operand.hbm [shape: f32[2,1,32], index: 11, kind: output, shape index: {}]  }
   0x1   :  { %18 = vsyncpa [#allocation3 + $0x1], 0  ;;  %s3254_s17 = smov 0   ;;  %s3256_s18 = smov 0  }
   0x2   :  { %s3258_s19 = smov 0   ;;  %s3260_s20 = smov 0  }
   0x3 LB: > { %4035 = sst [smem:[#allocation5_spill]] %s3179_s19  ;;  %s3275_s21 = sadd.s32 4294967295, %s3183_s20   ;;  %s3183_s20 = sphi %s3260_s20, %s4046_s20   ;;  %s3179_s19 = sphi %s3258_s19, %s4043_s19   ;;  %s3175_s18 = sphi %s3256_s18, %s4045_s18   ;;  %s3171_s17 = sphi %s3254_s17, %s4044_s17  }
   0x4   : > { %s2416_s22 = sadd.s32 4294967294, %s3183_s20   ;;  %s3279_s23 = sadd.s32 1, %s3183_s20  }
   0x5   : > { %s267_s24 = sadd.s32 1, %s3179_s19  ;;  %s264_s25 = ssub.s32 %s3183_s20, %s3279_s23 }
   0x6   : > { %p277_p0 = scmp.ne.s32.totalorder %s3179_s19, %s3175_s18  ;;  %p265_p1 = scmp.eq.s32.totalorder %s264_s25, 0 }
   0x7   : > { %p278_p2 = scmp.eq.s32.totalorder %s3275_s21, 1  ;;  %p283_p3 = scmp.ne.s32.totalorder %s3175_s18, %s3171_s17 }
   0x8   : > { %p284_p4 = scmp.eq.s32.totalorder %s2416_s22, 1  ;;  %p2419_p7 = scmp.ge.s32.totalorder %s3183_s20, 1 }
   0x9   : > { %s3290_s26 = scalar_select %p265_p1, %s3179_s19, %s267_s24  }
   0xa   : > { %p3292_p5 = por %p278_p2, %p277_p0  ;;  %p3296_p6 = por %p284_p4, %p283_p3 }
   0xb   : > { %4036 = sst [smem:[#allocation6_spill]] %s3290_s26  ;;  %p340_p8 = scmp.lt.s32.totalorder %s3183_s20, 3 }
   0xd   : > { %p341_p9 = pnand %p2419_p7, %p340_p8 }
   0xe   : > { %v405_v0 = vld [vmem:[%s4020_s1 + $0x80] sm:$0xff] (!%p341_p9)  ;;  %v406_v1 = vld [vmem:[%s4020_s1 + $0x88] sm:$0xff] (!%p341_p9)  ;;  %v407_v11 = vld [vmem:[%s4020_s1 + $0x90] sm:$0xff] (!%p341_p9)  ;;  %p379_p10 = scmp.lt.s32.totalorder (!%p341_p9), %s3275_s21, 1  ;;  %vm3187_vm0 = vmmov (!%p341_p9), 0   ;;  %vm689_vm1 = vcmask (!%p341_p9), 258048  }
   0xf   : > { %344 = sbr.rel (%p341_p9) target bundleno = 6604 (0x19cc), region = 64  ;;  %v389_v2 = vld [vmem:[%s4020_s1] sm:$0xff] (!%p341_p9)  ;;  %v2869_v3 = vpack.c.bf16 (!%p341_p9), %v406_v1, %v405_v0  ;;  %v390_v4 = vld [vmem:[%s4020_s1 + $0x8] sm:$0xff] (!%p341_p9)  ;;  %v408_v13 = vld [vmem:[%s4020_s1 + $0x98] sm:$0xff] (!%p341_p9)  ;;  %vm721_vm2 = vcmask (!%p341_p9), 261120   ;;  %s3189_s19 = smov (!%p341_p9), 96  }
  0x10   : > { %v437_v5 = vld [vmem:[%s4020_s1 + $0x180] sm:$0xff] (!%p341_p9)  ;;  %v438_v6 = vld [vmem:[%s4020_s1 + $0x188] sm:$0xff] (!%p341_p9)  ;;  %v2871_v7 = vpack.c.bf16 (!%p341_p9), %v390_v4, %v389_v2  ;;  %v391_v14 = vld [vmem:[%s4020_s1 + $0x10] sm:$0xff] (!%p341_p9)  ;;  %v2873_v16 = vpack.c.bf16 (!%p341_p9), %v408_v13, %v407_v11  ;;  %s3190_s12 = smov (!%p341_p9), 80   ;;  %vm798_vm3 = vcmask (!%p341_p9), 130048   ;;  %vm892_vm4 = vcmask (!%p341_p9), 1044480  }
  0x11   : > { %v2901_v8 = vpack.c.bf16 (!%p341_p9), %v438_v6, %v437_v5  ;;  %v421_v9 = vld [vmem:[%s4020_s1 + $0x100] sm:$0xff] (!%p341_p9)  ;;  %v422_v10 = vld [vmem:[%s4020_s1 + $0x108] sm:$0xff] (!%p341_p9)  ;;  %2870 = vmatprep.subr.bf16.mxu0 (!%p341_p9), %v2869_v3  ;;  %v392_v15 = vld [vmem:[%s4020_s1 + $0x18] sm:$0xff] (!%p341_p9)  ;;  %vm874_vm5 = vcmask (!%p341_p9), 36864   ;;  %s4034_s14 = smov (!%p341_p9), 112   ;;  %vm888_vm6 = vcmask (!%p341_p9), 39936  }
  0x12   : > { %v2903_v12 = vpack.c.bf16 (!%p341_p9), %v422_v10, %v421_v9  ;;  %2872 = vmatpush3.bf16.msra.mxu0 (!%p341_p9), %v2871_v7  ;;  %v2875_v17 = vpack.c.bf16 (!%p341_p9), %v392_v15, %v391_v14  ;;  %v439_v18 = vld [vmem:[%s4020_s1 + $0x190] sm:$0xff] (!%p341_p9)  ;;  %v440_v19 = vld [vmem:[%s4020_s1 + $0x198] sm:$0xff] (!%p341_p9)  ;;  %v409_v23 = vld [vmem:[%s4020_s1 + $0xa0] sm:$0xff] (!%p341_p9)  ;;  %s4032_s16 = smov (!%p341_p9), 48   ;;  %s4039_s24 = smov (!%p341_p9), 112   ;;  %vm2324_vm7 = vcmask (!%p341_p9), 253952  }
  0x13   : > { %2902 = vmatprep.subr.bf16.mxu1 (!%p341_p9), %v2901_v8  ;;  %v423_v20 = vld [vmem:[%s4020_s1 + $0x110] sm:$0xff] (!%p341_p9)  ;;  %v2905_v21 = vpack.c.bf16 (!%p341_p9), %v440_v19, %v439_v18  ;;  %v424_v22 = vld [vmem:[%s4020_s1 + $0x118] sm:$0xff] (!%p341_p9)  ;;  %v410_v24 = vld [vmem:[%s4020_s1 + $0xa8] sm:$0xff] (!%p341_p9)  ;;  %2874 = vmatprep.subr.bf16.mxu0 (!%p341_p9), %v2873_v16  ;;  %s4041_s26 = smov (!%p341_p9), 48   ;;  %s377_s30 = sand.u32 (!%p341_p9), 1, %s3175_s18  }
  0x14   : > { %2904 = vmatpush3.bf16.msra.mxu1 (!%p341_p9), %v2903_v12  ;;  %v2907_v25 = vpack.c.bf16 (!%p341_p9), %v424_v22, %v423_v20  ;;  %v2877_v26 = vpack.c.bf16 (!%p341_p9), %v410_v24, %v409_v23  ;;  %v393_v27 = vld [vmem:[%s4020_s1 + $0x20] sm:$0xff] (!%p341_p9)  ;;  %v394_v28 = vld [vmem:[%s4020_s1 + $0x28] sm:$0xff] (!%p341_p9)  ;;  %v411_v35 = vld [vmem:[%s4020_s1 + $0xb0] sm:$0xff] (!%p341_p9)  ;;  %s378_s22 = scalar_lea.vmem (!%p341_p9), [#allocation2], %s377_s30 }
  0x15   : > { %v441_v29 = vld [vmem:[%s4020_s1 + $0x1a0] sm:$0xff] (!%p341_p9)  ;;  %2906 = vmatprep.subr.bf16.mxu1 (!%p341_p9), %v2905_v21  ;;  %v442_v30 = vld [vmem:[%s4020_s1 + $0x1a8] sm:$0xff] (!%p341_p9)  ;;  %v2879_v33 = vpack.c.bf16 (!%p341_p9), %v394_v28, %v393_v27  ;;  %v412_v36 = vld [vmem:[%s4020_s1 + $0xb8] sm:$0xff] (!%p341_p9) }
  0x16   : > { %v425_v31 = vld [vmem:[%s4020_s1 + $0x120] sm:$0xff]  ;;  %v426_v32 = vld [vmem:[%s4020_s1 + $0x128] sm:$0xff]  ;;  %2876 = vmatpush3.bf16.msra.mxu0 %v2875_v17  ;;  %v2909_v34 = vpack.c.bf16 %v442_v30, %v441_v29  ;;  %v395_v37 = vld [vmem:[%s4020_s1 + $0x30] sm:$0xff]  ;;  %v2881_v39 = vpack.c.bf16 %v412_v36, %v411_v35  ;;  %s3396_s15 = scalar_select %p379_p10, %s3275_s21, 1 }
  0x17   : > { %2878 = vmatprep.subr.bf16.mxu0 %v2877_v26  ;;  %v2911_v38 = vpack.c.bf16 %v426_v32, %v425_v31  ;;  %v396_v40 = vld [vmem:[%s4020_s1 + $0x38] sm:$0xff]  ;;  %v443_v41 = vld [vmem:[%s4020_s1 + $0x1b0] sm:$0xff]  ;;  %v413_v46 = vld [vmem:[%s4020_s1 + $0xc0] sm:$0xff] }
  0x18   : > { %2908 = vmatpush3.bf16.msra.mxu1 %v2907_v25  ;;  %v444_v42 = vld [vmem:[%s4020_s1 + $0x1b8] sm:$0xff]  ;;  %v427_v44 = vld [vmem:[%s4020_s1 + $0x130] sm:$0xff]  ;;  %v414_v47 = vld [vmem:[%s4020_s1 + $0xc8] sm:$0xff]  ;;  %v2883_v48 = vpack.c.bf16 %v396_v40, %v395_v37  ;;  %s3041_s13 = smul.u32 40, %s3396_s15  ;;  %s2480_s15 = sshll.u32 %s3275_s21, 4 }
  0x19   : > { %2910 = vmatprep.subr.bf16.mxu1 %v2909_v34  ;;  %v2913_v43 = vpack.c.bf16 %v444_v42, %v443_v41  ;;  %v428_v45 = vld [vmem:[%s4020_s1 + $0x138] sm:$0xff]  ;;  %v445_v49 = vld [vmem:[%s4020_s1 + $0x1c0] sm:$0xff]  ;;  %v446_v50 = vld [vmem:[%s4020_s1 + $0x1c8] sm:$0xff]  ;;  %v2885_v52 = vpack.c.bf16 %v414_v47, %v413_v46  ;;  %v3186_v42 = vmov 0.0   ;;  %s3193_s21 = smov [#allocation2]  }
  0x1a   : > { %2880 = vmatpush3.bf16.msra.mxu0 %v2879_v33  ;;  %v2915_v51 = vpack.c.bf16 %v428_v45, %v427_v44  ;;  %v397_v53 = vld [vmem:[%s4020_s1 + $0x40] sm:$0xff]  ;;  %v398_v54 = vld [vmem:[%s4020_s1 + $0x48] sm:$0xff]  ;;  %v2917_v56 = vpack.c.bf16 %v446_v50, %v445_v49  ;;  %v415_v58 = vld [vmem:[%s4020_s1 + $0xd0] sm:$0xff]  ;;  %s3453_s29 = scalar_lea.vmem %s4019_s0, %s3041_s13  ;;  %s3976_s13 = scalar_lea.hbm %s4030_s11, %s2480_s15 }
  0x1b   : > { %2882 = vmatprep.subr.bf16.mxu0 %v2881_v39  ;;  %v429_v55 = vld [vmem:[%s4020_s1 + $0x140] sm:$0xff]  ;;  %v430_v57 = vld [vmem:[%s4020_s1 + $0x148] sm:$0xff]  ;;  %v416_v59 = vld [vmem:[%s4020_s1 + $0xd8] sm:$0xff]  ;;  %v2887_v62 = vpack.c.bf16 %v398_v54, %v397_v53 }
  0x1c   : > { %2912 = vmatpush3.bf16.msra.mxu1 %v2911_v38  ;;  %v447_v60 = vld [vmem:[%s4020_s1 + $0x1d0] sm:$0xff]  ;;  %v448_v61 = vld [vmem:[%s4020_s1 + $0x1d8] sm:$0xff]  ;;  %v2919_v63 = vpack.c.bf16 %v430_v57, %v429_v55  ;;  %v2889_v0 = vpack.c.bf16 %v416_v59, %v415_v58  ;;  %v417_v6 = vld [vmem:[%s4020_s1 + $0xe0] sm:$0xff]  ;;  %v3185_v38 = vmov 0.0|0.0  }
  0x1d   : > { %2914 = vmatprep.subr.bf16.mxu1 %v2913_v43  ;;  %v399_v1 = vld [vmem:[%s4020_s1 + $0x50] sm:$0xff]  ;;  %v400_v2 = vld [vmem:[%s4020_s1 + $0x58] sm:$0xff]  ;;  %v2921_v4 = vpack.c.bf16 %v448_v61, %v447_v60  ;;  %v418_v7 = vld [vmem:[%s4020_s1 + $0xe8] sm:$0xff] }
  0x1e   : > { %2884 = vmatpush3.bf16.msra.mxu0 %v2883_v48  ;;  %v431_v3 = vld [vmem:[%s4020_s1 + $0x150] sm:$0xff]  ;;  %v432_v5 = vld [vmem:[%s4020_s1 + $0x158] sm:$0xff]  ;;  %v449_v8 = vld [vmem:[%s4020_s1 + $0x1e0] sm:$0xff]  ;;  %v2891_v10 = vpack.c.bf16 %v400_v2, %v399_v1  ;;  %v2893_v14 = vpack.c.bf16 %v418_v7, %v417_v6 }
  0x1f   : > { %2886 = vmatprep.subr.bf16.mxu0 %v2885_v52  ;;  %v450_v9 = vld [vmem:[%s4020_s1 + $0x1e8] sm:$0xff]  ;;  %v401_v11 = vld [vmem:[%s4020_s1 + $0x60] sm:$0xff]  ;;  %v2923_v13 = vpack.c.bf16 %v432_v5, %v431_v3  ;;  %v419_v19 = vld [vmem:[%s4020_s1 + $0xf0] sm:$0xff] }
  0x20   : > { %2916 = vmatpush3.bf16.msra.mxu1 %v2915_v51  ;;  %v385_v12 = vld [vmem:[%s3453_s29 + $0x8] sm:$0x1f]  ;;  %v433_v16 = vld [vmem:[%s4020_s1 + $0x160] sm:$0xff]  ;;  %v2925_v18 = vpack.c.bf16 %v450_v9, %v449_v8  ;;  %v420_v20 = vld [vmem:[%s4020_s1 + $0xf8] sm:$0xff] }
  0x21   : > { %2918 = vmatprep.subr.bf16.mxu1 %v2917_v56  ;;  %v402_v15 = vld [vmem:[%s4020_s1 + $0x68] sm:$0xff]  ;;  %534 = vmatprep.mubr.f32.mxu0 %v385_v12  ;;  %v387_v21 = vld [vmem:[%s3453_s29 + $0x18] sm:$0x1f]  ;;  %v451_v22 = vld [vmem:[%s4020_s1 + $0x1f0] sm:$0xff]  ;;  %v2897_v26 = vpack.c.bf16 %v420_v20, %v419_v19 }
  0x22   : > { %2888 = vmatpush3.bf16.msra.mxu0 %v2887_v62  ;;  %v434_v17 = vld [vmem:[%s4020_s1 + $0x168] sm:$0xff]  ;;  %v452_v23 = vld [vmem:[%s4020_s1 + $0x1f8] sm:$0xff]  ;;  %604 = vmatprep.mubr.f32.mxu1 %v387_v21  ;;  %v2895_v24 = vpack.c.bf16 %v402_v15, %v401_v11  ;;  %v403_v27 = vld [vmem:[%s4020_s1 + $0x70] sm:$0xff] }
  0x23   : > { %2890 = vmatprep.subr.bf16.mxu0 %v2889_v0  ;;  %v2927_v25 = vpack.c.bf16 %v434_v17, %v433_v16  ;;  %v404_v28 = vld [vmem:[%s4020_s1 + $0x78] sm:$0xff]  ;;  %v2929_v29 = vpack.c.bf16 %v452_v23, %v451_v22  ;;  %v435_v30 = vld [vmem:[%s4020_s1 + $0x170] sm:$0xff]  ;;  %v453_v34 = vld [vmem:[%s4020_s1 + $0x200] sm:$0xff] }
  0x24   : > { %2920 = vmatpush3.bf16.msra.mxu1 %v2919_v63  ;;  %v436_v31 = vld [vmem:[%s4020_s1 + $0x178] sm:$0xff]  ;;  %v2899_v32 = vpack.c.bf16 %v404_v28, %v403_v27  ;;  %v454_v35 = vld [vmem:[%s4020_s1 + $0x208] sm:$0xff]  ;;  %v384_v36 = vld [vmem:[%s3453_s29] sm:$0x1f] }
  0x25   : > { %2922 = vmatprep.subr.bf16.mxu1 %v2921_v4  ;;  %v2931_v33 = vpack.c.bf16 %v436_v31, %v435_v30  ;;  %v2934_v37 = vpack.c.bf16 %v454_v35, %v453_v34  ;;  %v386_v39 = vld [vmem:[%s3453_s29 + $0x10] sm:$0x1f]  ;;  %v456_v41 = vld [vmem:[%s4020_s1 + $0x218] sm:$0xff]  ;;  %v457_v44 = vld [vmem:[%s4020_s1 + $0x220] sm:$0xff] }
  0x26   : > { %2892 = vmatpush3.bf16.msra.mxu0 %v2891_v10  ;;  %v455_v40 = vld [vmem:[%s4020_s1 + $0x210] sm:$0xff]  ;;  %v458_v45 = vld [vmem:[%s4020_s1 + $0x228] sm:$0xff]  ;;  %v460_v48 = vld [vmem:[%s4020_s1 + $0x238] sm:$0xff] }
  0x27   : > { %2894 = vmatprep.subr.bf16.mxu0 %v2893_v14  ;;  %v2937_v43 = vpack.c.bf16 %v456_v41, %v455_v40  ;;  %v2940_v46 = vpack.c.bf16 %v458_v45, %v457_v44  ;;  %v459_v47 = vld [vmem:[%s4020_s1 + $0x230] sm:$0xff]  ;;  %v461_v50 = vld [vmem:[%s4020_s1 + $0x240] sm:$0xff]  ;;  %v462_v51 = vld [vmem:[%s4020_s1 + $0x248] sm:$0xff] }
  0x28   : > { %2924 = vmatpush3.bf16.msra.mxu1 %v2923_v13  ;;  %v2943_v49 = vpack.c.bf16 %v460_v48, %v459_v47  ;;  %v2946_v52 = vpack.c.bf16 %v462_v51, %v461_v50  ;;  %v463_v53 = vld [vmem:[%s4020_s1 + $0x250] sm:$0xff]  ;;  %v464_v54 = vld [vmem:[%s4020_s1 + $0x258] sm:$0xff]  ;;  %v465_v56 = vld [vmem:[%s4020_s1 + $0x260] sm:$0xff] }
  0x29   : > { %2926 = vmatprep.subr.bf16.mxu1 %v2925_v18  ;;  %v2949_v55 = vpack.c.bf16 %v464_v54, %v463_v53  ;;  %v466_v57 = vld [vmem:[%s4020_s1 + $0x268] sm:$0xff]  ;;  %v467_v59 = vld [vmem:[%s4020_s1 + $0x270] sm:$0xff]  ;;  %v468_v60 = vld [vmem:[%s4020_s1 + $0x278] sm:$0xff] }
  0x2a   : > { %2896 = vmatpush3.bf16.msra.mxu0 %v2895_v24  ;;  %v2952_v58 = vpack.c.bf16 %v466_v57, %v465_v56  ;;  %v2955_v61 = vpack.c.bf16 %v468_v60, %v467_v59  ;;  %v388_v62 = vld [vmem:[%s3453_s29 + $0x20] sm:$0x1f]  ;;  %v682_v18 = vld [vmem:[%s4023_s4 + $0x8] sm:$0xff]  ;;  %v683_v20 = vld [vmem:[%s4023_s4 + $0x10] sm:$0xff]  ;;  %s4033_s29 = smov 64  }
  0x2b   : > { %2898 = vmatprep.subr.bf16.mxu0 %v2897_v26  ;;  %v469_v0 = vld [vmem:[%s4021_s2] sm:$0x1f]  ;;  %v684_v21 = vld [vmem:[%s4023_s4 + $0x18] sm:$0xff] }
  0x2c   : > { %2928 = vmatpush3.bf16.msra.mxu1 %v2927_v25  ;;  %v681_v17 = vld [vmem:[%s4023_s4] sm:$0xff]  ;;  %v2961_v22 = vpack.c.bf16 %v684_v21, %v683_v20  ;;  %v704_v25 = vlaneseq }
  0x2d   : > { %2930 = vmatprep.subr.bf16.mxu1 %v2929_v29  ;;  %v2958_v19 = vpack.c.bf16 %v682_v18, %v681_v17  ;;  %v3604_v29 = vld [vmem:[%s4022_s3] sm:$0xff] }
  0x2e   : > { %2900 = vmatpush3.bf16.msra.mxu0 %v2899_v32  ;;  %v3598_v27 = vshrl.u32 %v704_v25, 7 }
  0x2f   : > { %2933 = vmatprep.subr.bf16.mxu0 %v3185_v38 }
  0x30   : > { %2932 = vmatpush3.bf16.msra.mxu1 %v2931_v33  ;;  %v706_v28 = vsub.s32 0, %v3598_v27  ;;  %v711_v30 = vsub.s32 1, %v3598_v27 }
  0x31   : > { %2703 = vmatprep.subr.mxu1 %v3186_v42  ;;  %535 = vmatmul.mubr.f32.vlgmr.msra.gmra.mrb[0].mxu0 %v384_v36 }
  0x32   : > { %2935 = vmatpush3.bf16.msra.mxu0 %v2934_v37  ;;  %2684 = vmatprep.mubr.msk.f32.mxu0 %vm3187_vm0, %v3186_v42  ;;  %v707_v31 = vrot.slane %v3604_v29, %v706_v28  ;;  %v712_v34 = vrot.slane %v3604_v29, %v711_v30  ;;  %v2421_v37 = vld [vmem:[%s4024_s5] ss:$0 sm:$0xff] }
  0x33   : > { %605 = vmatmul.mubr.f32.vlgmr.msra.gmra.mrb[0].mxu1 %v386_v39  ;;  %2936 = vmatprep.subr.bf16.mxu0 %v3185_v38 }
  0x34   : > { %2705 = vmatprep.mubr.msk.f32.mxu1 %vm3187_vm0, %v3186_v42 }
  0x36   : > { %2938 = vmatpush3.bf16.msra.mxu0 %v2937_v43 }
  0x37   : > { %2939 = vmatprep.subr.bf16.mxu0 %v3185_v38 }
  0x3a   : > { %2941 = vmatpush3.bf16.msra.mxu0 %v2940_v46 }
  0x3b   : > { %2942 = vmatprep.subr.bf16.mxu0 %v3185_v38 }
  0x3e   : > { %2944 = vmatpush3.bf16.msra.mxu0 %v2943_v49 }
  0x3f   : > { %2945 = vmatprep.subr.bf16.mxu0 %v3185_v38 }
  0x42   : > { %2947 = vmatpush3.bf16.msra.mxu0 %v2946_v52 }
  0x43   : > { %2948 = vmatprep.subr.bf16.mxu0 %v3185_v38 }
  0x46   : > { %2950 = vmatpush3.bf16.msra.mxu0 %v2949_v55 }
  0x47   : > { %2951 = vmatprep.subr.bf16.mxu0 %v3185_v38 }
  0x4a   : > { %2953 = vmatpush3.bf16.msra.mxu0 %v2952_v58 }
  0x4b   : > { %2954 = vmatprep.subr.bf16.mxu0 %v3185_v38 }
  0x4e   : > { %2956 = vmatpush3.bf16.msra.mxu0 %v2955_v61 }
  0x4f   : > { %2957 = vmatprep.subr.bf16.mxu0 %v3185_v38 }
  0x51   : > { %2685 = vmatmul.mubr.f32.vlgmr.msra.gmra.mrb[2].mxu0 %v388_v62 }
  0x52   : > { %2695 = vmatprep.mubr.msk.f32.mxu0 %vm3187_vm0, %v3186_v42  ;;  %2959 = vmatpush3.bf16.msra.mxu0 %v2958_v19  ;;  %v1280_v19 = vsub.s32 2, %v3598_v27 }
  0x53   : > { %2960 = vmatprep.subr.bf16.mxu0 %v3185_v38 }
  0x56   : > { %2962 = vmatpush3.bf16.msra.mxu0 %v2961_v22  ;;  %v1285_v22 = vsub.s32 3, %v3598_v27 }
  0x57   : > { %2698 = vmatprep.subr.mxu0 %v3186_v42 }
 0x104   : > { %v2515_v63 = vpop.f32.mrb[0].mxu0 }
 0x105   : > { %v2516_v1 = vpop.f32.mrb[1].mxu0 }
 0x106   : > { %v2550_v2 = vpop.f32.mrb[0].mxu1  ;;  %v2517_v3 = vadd.f32 %v2516_v1, %v2515_v63 }
 0x107   : > { %v2551_v4 = vpop.f32.mrb[1].mxu1 }
 0x108   : > { %v2552_v5 = vadd.f32 %v2551_v4, %v2550_v2  ;;  %v537_v6 = vadd.f32 %v2517_v3, %v469_v0 }
 0x10a   : > { %v607_v7 = vadd.f32 %v2552_v5, %v537_v6 }
 0x124   : > { %v676_v8 = vpop.f32.mrb[2].mxu0 }
 0x125   : > { %v3578_v9 = vadd.f32 %v676_v8, %v607_v7  ;;  %v2686_v10 = vpop.f32.mrb[3].mxu0  ;;  %v687_v8 = vld [vmem:[%s4025_s6 + $0x10] sm:$0xff] }
 0x126   : > { %v688_v10 = vld [vmem:[%s4025_s6 + $0x18] sm:$0xff] }
 0x127   : > { %v690_v11 = vsel %vm689_vm1, %v3578_v9, 0.0 }
 0x128   : > { %691 = vadd.xlane.f32.xlu0 %v690_v11 }
 0x1b5   : > { %v692_v12 = vpop.xlane.xlu0 %691 }
 0x1b6   : > { %v694_v13 = vmul.f32 0.03125, %v692_v12  ;;  %v2964_v12 = vpack.c.bf16 %v688_v10, %v687_v8  ;;  %v1414_v8 = vld [vmem:[%s4028_s9 + $0x48] sm:$0xff]  ;;  %v1415_v10 = vld [vmem:[%s4028_s9 + $0x50] sm:$0xff] }
 0x1b8   : > { %v695_v14 = vsub.f32 %v3578_v9, %v694_v13 }
 0x1ba   : > { %v696_v15 = vmul.f32 %v695_v14, %v695_v14 }
 0x1bc   : > { %v697_v16 = vsel %vm689_vm1, %v696_v15, 0.0  ;;  %v686_v15 = vld [vmem:[%s4025_s6 + $0x8] sm:$0xff] }
 0x1bd   : > { %698 = vadd.xlane.f32.xlu0 %v697_v16 }
 0x24a   : > { %v699_v23 = vpop.xlane.xlu0 %698 }
 0x24b   : > { %v700_v24 = vmul.f32 0.03125, %v699_v23  ;;  %v1281_v23 = vrot.slane %v3604_v29, %v1280_v19 }
 0x24d   : > { %v701_v26 = vadd.f32 1e-06, %v700_v24 }
 0x24f   : > { %3089 = vrsqrt.f32 %v701_v26  ;;  %v1286_v26 = vrot.slane %v3604_v29, %v1285_v22 }
 0x259   : > { %v3090_v32 = vpop.eup %3089 }
 0x25a   : > { %v703_v33 = vmul.f32 %v3090_v32, %v695_v14  ;;  %v685_v14 = vld [vmem:[%s4025_s6] sm:$0xff] }
 0x25b   : > { %v2967_v16 = vpack.c.bf16 %v686_v15, %v685_v14  ;;  %v1417_v14 = vld [vmem:[%s4028_s9 + $0x60] sm:$0xff]  ;;  %v1418_v15 = vld [vmem:[%s4028_s9 + $0x68] sm:$0xff] }
 0x25c   : > { %v708_v35 = vmul.f32 %v707_v31, %v703_v33 }
 0x25e   : > { %v713_v36 = vadd.f32 %v712_v34, %v708_v35 }
 0x260   : > { %2696 = vmatmul.mubr.msk.f32.vlgmr.msra.gmra.mrb[4].mxu0 %vm721_vm2, %v713_v36 }
 0x261   : > { %2700 = vmatprep.mubr.msk.f32.mxu0 %vm3187_vm0, %v3186_v42 }
 0x333   : > { %v791_v39 = vpop.f32.mrb[4].mxu0 }
 0x334   : > { %v792_v40 = vadd.f32 %v2421_v37, %v791_v39  ;;  %v2697_v41 = vpop.f32.mrb[5].mxu0 }
 0x336   : > { %886 = vrot.lane.b32.xlu0 %v792_v40, %s4033_s29  ;;  %796 = vrot.lane.b32.xlu1 %v792_v40, %s3189_s19  ;;  %s2349_s29 = scalar_lea.sflag [#allocation3], %s377_s30 }
 0x33a   : > { %967 = vrot.lane.b32.xlu0 %v792_v40, %s3190_s12 }
 0x3a8   : > { %v887_v43 = vpop.permute.xlu0 %886  ;;  %v797_v44 = vpop.permute.xlu1 %796 }
 0x3a9   : > { %2699 = vmatpush3.xpose.msk.msra.mxu0 %vm798_vm3, %v797_v44  ;;  %2704 = vmatpush3.msk.msra.mxu1 %vm892_vm4, %v887_v43  ;;  %v1312_v43 = vld [vmem:[%s4026_s7] sm:$0xff] }
 0x3aa   : > { %2708 = vmatprep.subr.mxu1 %v3186_v42  ;;  %2969 = vmatprep.subr.bf16.mxu0 %v3185_v38 }
 0x3ac   : > { %2701 = vmatmul.mubr.msk.f32.vlgmr.msra.gmra.mrb[6].mxu0 %vm798_vm3, %v792_v40  ;;  %v968_v54 = vpop.permute.xlu0 %967 }
 0x3ad   : > { %2740 = vmatprep.mubr.msk.f32.mxu0 %vm3187_vm0, %v3186_v42 }
 0x47f   : > { %v869_v45 = vpop.f32.mrb[6].mxu0 }
 0x480   : > { %v873_v46 = vmul.f32 0.25, %v869_v45  ;;  %v2702_v47 = vpop.f32.mrb[7].mxu0  ;;  %v1314_v45 = vld [vmem:[%s4026_s7 + $0x10] sm:$0xff] }
 0x482   : > { %v875_v48 = vsel %vm874_vm5, %v873_v46, -inf }
 0x483   : > { %876 = vmax.xlane.f32.xlu1 %v875_v48  ;;  %v1405_v48 = vld [vmem:[%s4028_s9] sm:$0xff] }
 0x510   : > { %v877_v49 = vpop.xlane.xlu1 %876 }
 0x511   : > { %v878_v50 = vsub.f32 %v873_v46, %v877_v49  ;;  %v1315_v46 = vld [vmem:[%s4026_s7 + $0x18] sm:$0xff]  ;;  %v1406_v49 = vld [vmem:[%s4028_s9 + $0x8] sm:$0xff] }
 0x512   : > { %v2973_v47 = vpack.c.bf16 %v1315_v46, %v1314_v45 }
 0x513   : > { %v879_v51 = vmul.f32 1.442695, %v878_v50  ;;  %v2976_v50 = vpack.c.bf16 %v1406_v49, %v1405_v48 }
 0x515   : > { %3091 = vpow2.f32 %v879_v51 }
 0x51f   : > { %v3092_v52 = vpop.eup %3091 }
 0x520   : > { %v881_v53 = vsel %vm874_vm5, %v3092_v52, 0.0 }
 0x521   : > { %882 = vadd.xlane.f32.xlu0 %v881_v53 }
 0x537   : > { %965 = vrot.lane.b32.xlu0 %v792_v40, %s4034_s14 }
 0x5ae   : > { %v883_v55 = vpop.xlane.xlu0 %882 }
 0x5af   : > { %3093 = vrcp.f32 %v883_v55  ;;  %v1309_v55 = vsub.s32 5, %v3598_v27 }
 0x5b2   : > { %v966_v58 = vpop.permute.xlu0 %965 }
 0x5b9   : > { %v3094_v56 = vpop.eup %3093 }
 0x5ba   : > { %v885_v57 = vmul.f32 %v3094_v56, %v3092_v52 }
 0x5bc   : > { %2706 = vmatmul.mubr.msk.f32.vlgmr.msra.gmra.mrb[2].mxu1 %vm888_vm6, %v885_v57 }
 0x5bd   : > { %2709 = vmatpush3.xpose.msk.msra.mxu1 %vm798_vm3, %v968_v54  ;;  %2710 = vmatprep.mubr.msk.f32.mxu1 %vm3187_vm0, %v3186_v42  ;;  %v1304_v54 = vsub.s32 4, %v3598_v27 }
 0x5be   : > { %2713 = vmatprep.subr.mxu1 %v3186_v42 }
 0x5bf   : > { %v1305_v56 = vrot.slane %v3604_v29, %v1304_v54 }
 0x5c0   : > { %2711 = vmatmul.mubr.msk.f32.vlgmr.msra.gmra.mrb[4].mxu1 %vm798_vm3, %v966_v58 }
 0x5c1   : > { %2715 = vmatprep.mubr.msk.f32.mxu1 %vm3187_vm0, %v3186_v42 }
 0x68f   : > { %v961_v59 = vpop.f32.mrb[2].mxu1 }
 0x690   : > { %v2707_v60 = vpop.f32.mrb[3].mxu1 }
 0x693   : > { %v1039_v61 = vpop.f32.mrb[4].mxu1 }
 0x694   : > { %v1043_v62 = vmul.f32 0.25, %v1039_v61  ;;  %v2712_v63 = vpop.f32.mrb[5].mxu1 }
 0x695   : > { %v1408_v63 = vld [vmem:[%s4028_s9 + $0x18] sm:$0xff] }
 0x696   : > { %v1044_v0 = vsel %vm874_vm5, %v1043_v62, -inf }
 0x697   : > { %1045 = vmax.xlane.f32.xlu1 %v1044_v0 }
 0x6a8   : > { %1055 = vrot.lane.b32.xlu1 %v792_v40, %s4032_s16 }
 0x724   : > { %v1046_v1 = vpop.xlane.xlu1 %1045 }
 0x725   : > { %v1047_v2 = vsub.f32 %v1043_v62, %v1046_v1  ;;  %v1407_v62 = vld [vmem:[%s4028_s9 + $0x10] sm:$0xff]  ;;  %v1409_v1 = vld [vmem:[%s4028_s9 + $0x20] sm:$0xff] }
 0x726   : > { %v2979_v0 = vpack.c.bf16 %v1408_v63, %v1407_v62 }
 0x727   : > { %v1048_v3 = vmul.f32 1.442695, %v1047_v2  ;;  %v1410_v2 = vld [vmem:[%s4028_s9 + $0x28] sm:$0xff] }
 0x728   : > { %v1056_v4 = vpop.permute.xlu1 %1055 }
 0x729   : > { %3095 = vpow2.f32 %v1048_v3  ;;  %2714 = vmatpush3.msk.msra.mxu1 %vm892_vm4, %v1056_v4  ;;  %v2982_v3 = vpack.c.bf16 %v1410_v2, %v1409_v1  ;;  %v1411_v4 = vld [vmem:[%s4028_s9 + $0x30] sm:$0xff]  ;;  %v3801_v1 = vld [vmem:[%s4022_s3 + $0x8] sm:$0xff] }
 0x72a   : > { %2963 = vmatprep.subr.bf16.mxu1 %v3185_v38  ;;  %v1529_v2 = vrot.slane %v3801_v1, %v706_v28 }
 0x733   : > { %v3096_v5 = vpop.eup %3095 }
 0x734   : > { %v1050_v6 = vsel %vm874_vm5, %v3096_v5, 0.0 }
 0x735   : > { %1051 = vadd.xlane.f32.xlu0 %v1050_v6 }
 0x7c2   : > { %v1052_v7 = vpop.xlane.xlu0 %1051 }
 0x7c3   : > { %3097 = vrcp.f32 %v1052_v7  ;;  %v1413_v7 = vld [vmem:[%s4028_s9 + $0x40] sm:$0xff] }
 0x7cd   : > { %v3098_v11 = vpop.eup %3097 }
 0x7ce   : > { %v1054_v13 = vmul.f32 %v3098_v11, %v3096_v5  ;;  %v1412_v5 = vld [vmem:[%s4028_s9 + $0x38] sm:$0xff]  ;;  %v2988_v11 = vpack.c.bf16 %v1414_v8, %v1413_v7  ;;  %v2445_v8 = vld [vmem:[%s4024_s5 + $0x1] ss:$0 sm:$0xff] }
 0x7cf   : > { %v2985_v6 = vpack.c.bf16 %v1412_v5, %v1411_v4  ;;  %v1534_v5 = vrot.slane %v3801_v1, %v711_v30 }
 0x7d0   : > { %2716 = vmatmul.mubr.msk.f32.vlgmr.msra.gmra.mrb[6].mxu1 %vm888_vm6, %v1054_v13 }
 0x7d1   : > { %2965 = vmatpush3.bf16.msra.mxu1 %v2964_v12  ;;  %2722 = vmatprep.mubr.msk.f32.mxu1 %vm3187_vm0, %v3186_v42  ;;  %v1416_v12 = vld [vmem:[%s4028_s9 + $0x58] sm:$0xff] }
 0x7d2   : > { %2966 = vmatprep.subr.bf16.mxu1 %v3185_v38  ;;  %v2991_v13 = vpack.c.bf16 %v1416_v12, %v1415_v10 }
 0x8a3   : > { %v1128_v17 = vpop.f32.mrb[6].mxu1 }
 0x8a4   : > { %v2717_v18 = vpop.f32.mrb[7].mxu1  ;;  %2723 = vmatmul.mubr.msk.f32.vlgmr.msra.gmra.mrb[8].mxu1 %vm798_vm3, %v1128_v17  ;;  %v1419_v17 = vld [vmem:[%s4028_s9 + $0x70] sm:$0xff] }
 0x8a5   : > { %2968 = vmatpush3.bf16.msra.mxu1 %v2967_v16  ;;  %2729 = vmatprep.mubr.msk.f32.mxu1 %vm3187_vm0, %v3186_v42  ;;  %v2994_v16 = vpack.c.bf16 %v1418_v15, %v1417_v14  ;;  %v1420_v18 = vld [vmem:[%s4028_s9 + $0x78] sm:$0xff] }
 0x8a6   : > { %2975 = vmatprep.subr.bf16.mxu1 %v3185_v38 }
 0x8a8   : > { %2730 = vmatmul.mubr.msk.f32.vlgmr.msra.gmra.mrb[10].mxu1 %vm798_vm3, %v961_v59  ;;  %v1310_v59 = vrot.slane %v3604_v29, %v1309_v55 }
 0x8a9   : > { %2775 = vmatprep.mubr.msk.f32.mxu1 %vm3187_vm0, %v3186_v42  ;;  %2977 = vmatpush3.bf16.msra.mxu1 %v2976_v50 }
 0x8aa   : > { %2978 = vmatprep.subr.bf16.mxu1 %v3185_v38 }
 0x8ad   : > { %2980 = vmatpush3.bf16.msra.mxu1 %v2979_v0 }
 0x8ae   : > { %2981 = vmatprep.subr.bf16.mxu1 %v3185_v38 }
 0x8b1   : > { %2983 = vmatpush3.bf16.msra.mxu1 %v2982_v3 }
 0x8b2   : > { %2984 = vmatprep.subr.bf16.mxu1 %v3185_v38 }
 0x8b5   : > { %2986 = vmatpush3.bf16.msra.mxu1 %v2985_v6 }
 0x8b6   : > { %2987 = vmatprep.subr.bf16.mxu1 %v3185_v38 }
 0x8b9   : > { %2989 = vmatpush3.bf16.msra.mxu1 %v2988_v11 }
 0x8ba   : > { %2990 = vmatprep.subr.bf16.mxu1 %v3185_v38 }
 0x8bd   : > { %2992 = vmatpush3.bf16.msra.mxu1 %v2991_v13 }
 0x8be   : > { %2993 = vmatprep.subr.bf16.mxu1 %v3185_v38 }
 0x8c1   : > { %2995 = vmatpush3.bf16.msra.mxu1 %v2994_v16 }
 0x8c2   : > { %2996 = vmatprep.subr.bf16.mxu1 %v3185_v38 }
 0x977   : > { %v1201_v20 = vpop.f32.mrb[8].mxu1 }
 0x978   : > { %v2724_v21 = vpop.f32.mrb[9].mxu1 }
 0x979   : > { %v2433_v21 = vld [vmem:[%s4027_s8] ss:$0 sm:$0xff] }
 0x97b   : > { %v1274_v24 = vpop.f32.mrb[10].mxu1 }
 0x97c   : > { %v1275_v25 = vadd.f32 %v1274_v24, %v1201_v20  ;;  %v2731_v31 = vpop.f32.mrb[11].mxu1  ;;  %v2997_v20 = vpack.c.bf16 %v1420_v18, %v1419_v17 }
 0x97e   : > { %v1282_v32 = vadd.f32 %v1281_v23, %v1275_v25  ;;  %2998 = vmatpush3.bf16.msra.mxu1 %v2997_v20 }
 0x97f   : > { %3008 = vmatprep.subr.bf16.mxu1 %v3185_v38 }
 0x980   : > { %v1287_v33 = vmul.f32 %v1286_v26, %v1282_v32 }
 0x982   : > { %v3677_v34 = vadd.f32 %v1287_v33, %v3578_v9  ;;  %v1313_v9 = vld [vmem:[%s4026_s7 + $0x8] sm:$0xff] }
 0x983   : > { %v2970_v44 = vpack.c.bf16 %v1313_v9, %v1312_v43  ;;  %v1497_v43 = vsub.s32 7, %v3598_v27 }
 0x984   : > { %v1289_v35 = vsel %vm689_vm1, %v3677_v34, 0.0 }
 0x985   : > { %1290 = vadd.xlane.f32.xlu1 %v1289_v35  ;;  %2971 = vmatpush3.bf16.msra.mxu0 %v2970_v44  ;;  %v1498_v44 = vrot.slane %v3604_v29, %v1497_v43 }
 0x986   : > { %2972 = vmatprep.subr.bf16.mxu0 %v3185_v38 }
 0x989   : > { %2974 = vmatpush3.bf16.msra.mxu0 %v2973_v47 }
 0x98a   : > { %2999 = vmatprep.subr.bf16.mxu0 %v3185_v38 }
 0xa12   : > { %v1291_v36 = vpop.xlane.xlu1 %1290 }
 0xa13   : > { %v1292_v37 = vmul.f32 0.03125, %v1291_v36 }
 0xa15   : > { %v1293_v39 = vsub.f32 %v3677_v34, %v1292_v37 }
 0xa17   : > { %v1294_v40 = vmul.f32 %v1293_v39, %v1293_v39 }
 0xa19   : > { %v1295_v41 = vsel %vm689_vm1, %v1294_v40, 0.0 }
 0xa1a   : > { %1296 = vadd.xlane.f32.xlu0 %v1295_v41  ;;  %v1423_v41 = vsub.s32 6, %v3598_v27 }
 0xa1c   : > { %v1424_v9 = vrot.slane %v3604_v29, %v1423_v41  ;;  %v2436_v29 = vld [vmem:[%s4023_s4 + $0x20] sm:$0xff] }
 0xaa7   : > { %v1297_v51 = vpop.xlane.xlu0 %1296 }
 0xaa8   : > { %v1298_v52 = vmul.f32 0.03125, %v1297_v51 }
 0xaaa   : > { %v1299_v53 = vadd.f32 1e-06, %v1298_v52 }
 0xaac   : > { %3099 = vrsqrt.f32 %v1299_v53 }
 0xab6   : > { %v3100_v57 = vpop.eup %3099 }
 0xab7   : > { %v1301_v58 = vmul.f32 %v3100_v57, %v1293_v39 }
 0xab9   : > { %v1306_v60 = vmul.f32 %v1305_v56, %v1301_v58 }
 0xabb   : > { %v1311_v61 = vadd.f32 %v1310_v59, %v1306_v60  ;;  %v2438_v59 = vld [vmem:[%s4023_s4 + $0x30] sm:$0xff]  ;;  %v2439_v60 = vld [vmem:[%s4023_s4 + $0x38] sm:$0xff] }
 0xabd   : > { %2741 = vmatmul.mubr.msk.f32.vlgmr.msra.gmra.mrb[8].mxu0 %vm721_vm2, %v1311_v61  ;;  %v3003_v61 = vpack.c.bf16 %v2439_v60, %v2438_v59 }
 0xabe   : > { %2786 = vmatprep.mubr.msk.f32.mxu0 %vm3187_vm0, %v3186_v42 }
 0xb90   : > { %v1392_v23 = vpop.f32.mrb[8].mxu0 }
 0xb91   : > { %v1393_v24 = vadd.f32 %v2433_v21, %v1392_v23  ;;  %v2742_v25 = vpop.f32.mrb[9].mxu0  ;;  %v2440_v23 = vld [vmem:[%s4025_s6 + $0x20] sm:$0xff] }
 0xb93   : > { %v1396_v26 = vmul.f32 %v1393_v24, %v1393_v24 }
 0xb95   : > { %v1397_v31 = vmul.f32 %v1396_v26, %v1393_v24 }
 0xb97   : > { %v1398_v32 = vmul.f32 0.044715, %v1397_v31 }
 0xb99   : > { %v1399_v33 = vadd.f32 %v1398_v32, %v1393_v24 }
 0xb9b   : > { %v1400_v35 = vmul.f32 0.7978846, %v1399_v33 }
 0xb9d   : > { %3101 = vtanh.f32 %v1400_v35 }
 0xba7   : > { %v3102_v36 = vpop.eup %3101 }
 0xba8   : > { %v1402_v37 = vadd.f32 1.0, %v3102_v36 }
 0xbaa   : > { %v1403_v39 = vmul.f32 0.5, %v1402_v37 }
 0xbac   : > { %v1404_v40 = vmul.f32 %v1403_v39, %v1393_v24  ;;  %v2441_v24 = vld [vmem:[%s4025_s6 + $0x28] sm:$0xff] }
 0xbad   : > { %v3009_v25 = vpack.c.bf16 %v2441_v24, %v2440_v23  ;;  %v2123_v23 = vrot.slane %v3801_v1, %v1304_v54  ;;  %v2468_v54 = vld [vmem:[%s4028_s9 + $0xa0] sm:$0xff] }
 0xbae   : > { %2776 = vmatmul.mubr.f32.vlgmr.msra.gmra.mrb[12].mxu1 %v1404_v40 }
 0xbaf   : > { %2820 = vmatprep.mubr.msk.f32.mxu1 %vm3187_vm0, %v3186_v42  ;;  %3010 = vmatpush3.bf16.msra.mxu1 %v3009_v25 }
 0xbb0   : > { %3017 = vmatprep.subr.bf16.mxu1 %v3185_v38 }
 0xc81   : > { %v1491_v45 = vpop.f32.mrb[12].mxu1 }
 0xc82   : > { %v1492_v46 = vadd.f32 %v1491_v45, %v1424_v9  ;;  %v2777_v47 = vpop.f32.mrb[13].mxu1 }
 0xc84   : > { %v1499_v48 = vmul.f32 %v1498_v44, %v1492_v46 }
 0xc86   : > { %v3778_v49 = vadd.f32 %v1499_v48, %v3677_v34  ;;  %v2437_v34 = vld [vmem:[%s4023_s4 + $0x28] sm:$0xff] }
 0xc87   : > { %v3000_v58 = vpack.c.bf16 %v2437_v34, %v2436_v29  ;;  %v2442_v29 = vld [vmem:[%s4025_s6 + $0x30] sm:$0xff]  ;;  %v2443_v34 = vld [vmem:[%s4025_s6 + $0x38] sm:$0xff] }
 0xc88   : > { %v1513_v50 = vsel %vm689_vm1, %v3778_v49, 0.0  ;;  %v3006_v59 = vpack.c.bf16 %v2443_v34, %v2442_v29  ;;  %v2462_v34 = vld [vmem:[%s4027_s8 + $0x1] ss:$0 sm:$0xff] }
 0xc89   : > { %1514 = vadd.xlane.f32.xlu0 %v1513_v50  ;;  %3001 = vmatpush3.bf16.msra.mxu0 %v3000_v58 }
 0xc8a   : > { %3002 = vmatprep.subr.bf16.mxu0 %v3185_v38 }
 0xc8d   : > { %3004 = vmatpush3.bf16.msra.mxu0 %v3003_v61 }
 0xc8e   : > { %2789 = vmatprep.subr.mxu0 %v3186_v42 }
 0xd16   : > { %v1515_v51 = vpop.xlane.xlu0 %1514 }
 0xd17   : > { %v1516_v52 = vmul.f32 0.03125, %v1515_v51 }
 0xd19   : > { %v1517_v53 = vsub.f32 %v3778_v49, %v1516_v52 }
 0xd1b   : > { %v1518_v56 = vmul.f32 %v1517_v53, %v1517_v53 }
 0xd1d   : > { %v1519_v57 = vsel %vm689_vm1, %v1518_v56, 0.0 }
 0xd1e   : > { %1520 = vadd.xlane.f32.xlu0 %v1519_v57 }
 0xdab   : > { %v1521_v62 = vpop.xlane.xlu0 %1520 }
 0xdac   : > { %v1522_v63 = vmul.f32 0.03125, %v1521_v62 }
 0xdae   : > { %v1523_v0 = vadd.f32 1e-06, %v1522_v63  ;;  %v2099_v63 = vrot.slane %v3801_v1, %v1280_v19 }
 0xdb0   : > { %3103 = vrsqrt.f32 %v1523_v0 }
 0xdba   : > { %v3104_v3 = vpop.eup %3103 }
 0xdbb   : > { %v1525_v4 = vmul.f32 %v3104_v3, %v1517_v53  ;;  %v2104_v3 = vrot.slane %v3801_v1, %v1285_v22  ;;  %v2457_v22 = vld [vmem:[%s4026_s7 + $0x20] sm:$0xff] }
 0xdbd   : > { %v1530_v6 = vmul.f32 %v1529_v2, %v1525_v4 }
 0xdbf   : > { %v1535_v7 = vadd.f32 %v1534_v5, %v1530_v6 }
 0xdc1   : > { %2787 = vmatmul.mubr.msk.f32.vlgmr.msra.gmra.mrb[10].mxu0 %vm721_vm2, %v1535_v7 }
 0xdc2   : > { %2791 = vmatprep.mubr.msk.f32.mxu0 %vm3187_vm0, %v3186_v42 }
 0xe94   : > { %v1613_v10 = vpop.f32.mrb[10].mxu0 }
 0xe95   : > { %v1614_v11 = vadd.f32 %v2445_v8, %v1613_v10  ;;  %v2788_v28 = vpop.f32.mrb[11].mxu0 }
 0xe97   : > { %1618 = vrot.lane.b32.xlu0 %v1614_v11, %s3189_s19  ;;  %s4040_s19 = smov 64  }
 0xe9b   : > { %1785 = vrot.lane.b32.xlu0 %v1614_v11, %s3190_s12 }
 0xe9f   : > { %1783 = vrot.lane.b32.xlu0 %v1614_v11, %s4039_s24  ;;  %s2361_s24 = sshll.u32 %s378_s22, 4  ;;  %s3978_s24 = int_to_ptr.vmem [resolvable:$true] %s2361_s24 }
 0xea0   : > { %s3121_s14 = scalar_lea.vmem %s3978_s24, 16 }
 0xea1   : > { %p3122_p11 = scmp.ne.s32.totalorder %s3978_s24, %s3121_s14 }
 0xea3   : > { %p3123_p12 = pnand %p3122_p11, %p3292_p5 }
 0xea5   : > { %p3124_p13 = pneg %p3123_p12 }
 0xf09   : > { %v1619_v30 = vpop.permute.xlu0 %1618 }
 0xf0a   : > { %2790 = vmatpush3.xpose.msk.msra.mxu0 %vm798_vm3, %v1619_v30 }
 0xf0b   : > { %2794 = vmatprep.subr.mxu0 %v3186_v42 }
 0xf0d   : > { %2792 = vmatmul.mubr.msk.f32.vlgmr.msra.gmra.mrb[12].mxu0 %vm798_vm3, %v1614_v11  ;;  %v1786_v33 = vpop.permute.xlu0 %1785 }
 0xf0e   : > { %2796 = vmatprep.mubr.msk.f32.mxu0 %vm3187_vm0, %v3186_v42 }
 0xf11   : > { %v1784_v36 = vpop.permute.xlu0 %1783 }
 0xfe0   : > { %v1690_v12 = vpop.f32.mrb[12].mxu0 }
 0xfe1   : > { %v1694_v13 = vmul.f32 0.25, %v1690_v12  ;;  %v2793_v14 = vpop.f32.mrb[13].mxu0  ;;  %v2459_v12 = vld [vmem:[%s4026_s7 + $0x30] sm:$0xff] }
 0xfe3   : > { %v1695_v15 = vsel %vm874_vm5, %v1694_v13, -inf }
 0xfe4   : > { %1696 = vmax.xlane.f32.xlu1 %v1695_v15  ;;  %v2464_v15 = vld [vmem:[%s4028_s9 + $0x80] sm:$0xff] }
0x1071   : > { %v1697_v16 = vpop.xlane.xlu1 %1696 }
0x1072   : > { %v1698_v17 = vsub.f32 %v1694_v13, %v1697_v16  ;;  %v2460_v13 = vld [vmem:[%s4026_s7 + $0x38] sm:$0xff]  ;;  %v2465_v16 = vld [vmem:[%s4028_s9 + $0x88] sm:$0xff] }
0x1073   : > { %v3015_v14 = vpack.c.bf16 %v2460_v13, %v2459_v12 }
0x1074   : > { %v1699_v18 = vmul.f32 1.442695, %v1698_v17  ;;  %v3018_v17 = vpack.c.bf16 %v2465_v16, %v2464_v15  ;;  %v2323_v16 = vld [vmem:[%s4029_s10 + $0x1] sm:$0x1] }
0x1076   : > { %3105 = vpow2.f32 %v1699_v18 }
0x1080   : > { %v3106_v20 = vpop.eup %3105 }
0x1081   : > { %v1701_v21 = vsel %vm874_vm5, %v3106_v20, 0.0 }
0x1082   : > { %1702 = vadd.xlane.f32.xlu1 %v1701_v21 }
0x1093   : > { %1706 = vrot.lane.b32.xlu1 %v1614_v11, %s4040_s19 }
0x110f   : > { %v1703_v26 = vpop.xlane.xlu1 %1702 }
0x1110   : > { %3107 = vrcp.f32 %v1703_v26  ;;  %v2128_v26 = vrot.slane %v3801_v1, %v1309_v55  ;;  %v2469_v55 = vld [vmem:[%s4028_s9 + $0xa8] sm:$0xff] }
0x1113   : > { %v1707_v31 = vpop.permute.xlu1 %1706 }
0x1114   : > { %2795 = vmatpush3.msk.msra.mxu0 %vm892_vm4, %v1707_v31 }
0x1115   : > { %2799 = vmatprep.subr.mxu0 %v3186_v42 }
0x111a   : > { %v3108_v32 = vpop.eup %3107 }
0x111b   : > { %v1705_v35 = vmul.f32 %v3108_v32, %v3106_v20 }
0x111d   : > { %2797 = vmatmul.mubr.msk.f32.vlgmr.msra.gmra.mrb[14].mxu0 %vm888_vm6, %v1705_v35  ;;  %v2467_v35 = vld [vmem:[%s4028_s9 + $0x98] sm:$0xff] }
0x111e   : > { %2800 = vmatpush3.xpose.msk.msra.mxu0 %vm798_vm3, %v1786_v33  ;;  %2801 = vmatprep.mubr.msk.f32.mxu0 %vm3187_vm0, %v3186_v42  ;;  %v2466_v33 = vld [vmem:[%s4028_s9 + $0x90] sm:$0xff] }
0x111f   : > { %2804 = vmatprep.subr.mxu0 %v3186_v42 }
0x1121   : > { %2802 = vmatmul.mubr.msk.f32.vlgmr.msra.gmra.mrb[16].mxu0 %vm798_vm3, %v1784_v36  ;;  %v3021_v36 = vpack.c.bf16 %v2467_v35, %v2466_v33 }
0x1122   : > { %2806 = vmatprep.mubr.msk.f32.mxu0 %vm3187_vm0, %v3186_v42 }
0x11f0   : > { %v1779_v37 = vpop.f32.mrb[14].mxu0 }
0x11f1   : > { %v2798_v39 = vpop.f32.mrb[15].mxu0  ;;  %2821 = vmatmul.mubr.msk.f32.vlgmr.msra.gmra.mrb[14].mxu1 %vm798_vm3, %v1779_v37  ;;  %v3024_v37 = vpack.c.bf16 %v2469_v55, %v2468_v54 }
0x11f2   : > { %2866 = vmatprep.mubr.msk.f32.mxu1 %vm3187_vm0, %v3186_v42  ;;  %3019 = vmatpush3.bf16.msra.mxu1 %v3018_v17  ;;  %v2470_v39 = vld [vmem:[%s4028_s9 + $0xb0] sm:$0xff] }
0x11f3   : > { %3020 = vmatprep.subr.bf16.mxu1 %v3185_v38 }
0x11f4   : > { %v1857_v40 = vpop.f32.mrb[16].mxu0 }
0x11f5   : > { %v1861_v9 = vmul.f32 0.25, %v1857_v40  ;;  %v2803_v44 = vpop.f32.mrb[17].mxu0  ;;  %v2471_v40 = vld [vmem:[%s4028_s9 + $0xb8] sm:$0xff] }
0x11f6   : > { %3022 = vmatpush3.bf16.msra.mxu1 %v3021_v36  ;;  %v2472_v44 = vld [vmem:[%s4028_s9 + $0xc0] sm:$0xff] }
0x11f7   : > { %v1862_v45 = vsel %vm874_vm5, %v1861_v9, -inf  ;;  %3023 = vmatprep.subr.bf16.mxu1 %v3185_v38 }
0x11f8   : > { %1863 = vmax.xlane.f32.xlu0 %v1862_v45  ;;  %v2473_v45 = vld [vmem:[%s4028_s9 + $0xc8] sm:$0xff] }
0x11fa   : > { %3025 = vmatpush3.bf16.msra.mxu1 %v3024_v37 }
0x11fb   : > { %3026 = vmatprep.subr.bf16.mxu1 %v3185_v38 }
0x120e   : > { %1873 = vrot.lane.b32.xlu0 %v1614_v11, %s4041_s26  ;;  %s3125_s26 = sshll.u32 %s3193_s21, 4  ;;  %s3126_s26 = int_to_ptr.vmem [resolvable:$false] %s3125_s26 }
0x120f   : > { %s3127_s25 = scalar_lea.vmem %s3126_s26, 32  ;;  %p3128_p0 = scmp.lt.s32.totalorder %s3978_s24, %s3126_s26 }
0x1210   : > { %p3129_p1 = scmp.lt.s32.totalorder %s3127_s25, %s3121_s14 }
0x1212   : > { %p3130_p2 = por %p3129_p1, %p3128_p0 }
0x1214   : > { %p3131_p3 = pnand %p3130_p2, %p3124_p13 }
0x1285   : > { %v1864_v46 = vpop.xlane.xlu0 %1863 }
0x1286   : > { %v1865_v47 = vsub.f32 %v1861_v9, %v1864_v46  ;;  %v3027_v9 = vpack.c.bf16 %v2471_v40, %v2470_v39  ;;  %v2474_v46 = vld [vmem:[%s4028_s9 + $0xd0] sm:$0xff] }
0x1288   : > { %v1866_v48 = vmul.f32 1.442695, %v1865_v47  ;;  %3028 = vmatpush3.bf16.msra.mxu1 %v3027_v9  ;;  %v3030_v47 = vpack.c.bf16 %v2473_v45, %v2472_v44 }
0x1289   : > { %v1874_v50 = vpop.permute.xlu0 %1873  ;;  %3029 = vmatprep.subr.bf16.mxu1 %v3185_v38 }
0x128a   : > { %3109 = vpow2.f32 %v1866_v48  ;;  %2805 = vmatpush3.msk.msra.mxu0 %vm892_vm4, %v1874_v50  ;;  %v2475_v48 = vld [vmem:[%s4028_s9 + $0xd8] sm:$0xff] }
0x128b   : > { %3005 = vmatprep.subr.bf16.mxu0 %v3185_v38  ;;  %v3033_v50 = vpack.c.bf16 %v2475_v48, %v2474_v46 }
0x128c   : > { %3031 = vmatpush3.bf16.msra.mxu1 %v3030_v47 }
0x128d   : > { %3032 = vmatprep.subr.bf16.mxu1 %v3185_v38 }
0x1290   : > { %3034 = vmatpush3.bf16.msra.mxu1 %v3033_v50 }
0x1291   : > { %3035 = vmatprep.subr.bf16.mxu1 %v3185_v38 }
0x1294   : > { %v3110_v51 = vpop.eup %3109 }
0x1295   : > { %v1868_v52 = vsel %vm874_vm5, %v3110_v51, 0.0 }
0x1296   : > { %1869 = vadd.xlane.f32.xlu1 %v1868_v52  ;;  %v2477_v52 = vld [vmem:[%s4028_s9 + $0xe8] sm:$0xff] }
0x12c4   : > { %v2092_v53 = vpop.f32.mrb[14].mxu1 }
0x12c5   : > { %v2822_v56 = vpop.f32.mrb[15].mxu1 }
0x12c6   : > { %v2478_v56 = vld [vmem:[%s4028_s9 + $0xf0] sm:$0xff] }
0x1323   : > { %v1870_v57 = vpop.xlane.xlu1 %1869 }
0x1324   : > { %3111 = vrcp.f32 %v1870_v57  ;;  %v2479_v57 = vld [vmem:[%s4028_s9 + $0xf8] sm:$0xff] }
0x1325   : > { %v3039_v29 = vpack.c.bf16 %v2479_v57, %v2478_v56 }
0x132e   : > { %v3112_v58 = vpop.eup %3111 }
0x132f   : > { %v1872_v60 = vmul.f32 %v3112_v58, %v3110_v51  ;;  %v2476_v51 = vld [vmem:[%s4028_s9 + $0xe0] sm:$0xff] }
0x1331   : > { %2807 = vmatmul.mubr.msk.f32.vlgmr.msra.gmra.mrb[18].mxu0 %vm888_vm6, %v1872_v60 }
0x1332   : > { %3007 = vmatpush3.bf16.msra.mxu0 %v3006_v59  ;;  %2813 = vmatprep.mubr.msk.f32.mxu0 %vm3187_vm0, %v3186_v42 }
0x1333   : > { %3011 = vmatprep.subr.bf16.mxu0 %v3185_v38 }
0x1404   : > { %v1946_v61 = vpop.f32.mrb[18].mxu0 }
0x1405   : > { %v2808_v62 = vpop.f32.mrb[19].mxu0  ;;  %2814 = vmatmul.mubr.msk.f32.vlgmr.msra.gmra.mrb[20].mxu0 %vm798_vm3, %v1946_v61 }
0x1406   : > { %2831 = vmatprep.mubr.msk.f32.mxu0 %vm3187_vm0, %v3186_v42 }
0x14d8   : > { %v2019_v0 = vpop.f32.mrb[20].mxu0 }
0x14d9   : > { %v2093_v2 = vadd.f32 %v2092_v53, %v2019_v0  ;;  %v2815_v4 = vpop.f32.mrb[21].mxu0  ;;  %v3036_v53 = vpack.c.bf16 %v2477_v52, %v2476_v51 }
0x14db   : > { %v2100_v5 = vadd.f32 %v2099_v63, %v2093_v2  ;;  %3037 = vmatpush3.bf16.msra.mxu1 %v3036_v53 }
0x14dc   : > { %3038 = vmatprep.subr.bf16.mxu1 %v3185_v38 }
0x14dd   : > { %v2105_v6 = vmul.f32 %v2104_v3, %v2100_v5 }
0x14df   : > { %v3871_v7 = vadd.f32 %v2105_v6, %v3778_v49  ;;  %v2458_v49 = vld [vmem:[%s4026_s7 + $0x28] sm:$0xff]  ;;  %3040 = vmatpush3.bf16.msra.mxu1 %v3039_v29 }
0x14e0   : > { %v3012_v30 = vpack.c.bf16 %v2458_v49, %v2457_v22 }
0x14e1   : > { %v2107_v8 = vsel %vm689_vm1, %v3871_v7, 0.0 }
0x14e2   : > { %2108 = vadd.xlane.f32.xlu1 %v2107_v8  ;;  %3013 = vmatpush3.bf16.msra.mxu0 %v3012_v30  ;;  %v2319_v8 = vrot.slane %v3801_v1, %v1497_v43 }
0x14e3   : > { %3014 = vmatprep.subr.bf16.mxu0 %v3185_v38  ;;  %v2245_v38 = vrot.slane %v3801_v1, %v1423_v41 }
0x14e6   : > { %3016 = vmatpush3.bf16.msra.mxu0 %v3015_v14 }
0x156f   : > { %v2109_v42 = vpop.xlane.xlu1 %2108 }
0x1570   : > { %v2110_v10 = vmul.f32 0.03125, %v2109_v42 }
0x1572   : > { %v2111_v19 = vsub.f32 %v3871_v7, %v2110_v10 }
0x1574   : > { %v2112_v11 = vmul.f32 %v2111_v19, %v2111_v19 }
0x1576   : > { %v2113_v28 = vsel %vm689_vm1, %v2112_v11, 0.0 }
0x1577   : > { %2114 = vadd.xlane.f32.xlu1 %v2113_v28 }
0x1604   : > { %v2115_v18 = vpop.xlane.xlu1 %2114 }
0x1605   : > { %v2116_v20 = vmul.f32 0.03125, %v2115_v18 }
0x1607   : > { %v2117_v21 = vadd.f32 1e-06, %v2116_v20 }
0x1609   : > { %3113 = vrsqrt.f32 %v2117_v21 }
0x1613   : > { %v3114_v24 = vpop.eup %3113 }
0x1614   : > { %v2119_v25 = vmul.f32 %v3114_v24, %v2111_v19 }
0x1616   : > { %v2124_v31 = vmul.f32 %v2123_v23, %v2119_v25 }
0x1618   : > { %v2129_v32 = vadd.f32 %v2128_v26, %v2124_v31 }
0x161a   : > { %2832 = vmatmul.mubr.msk.f32.vlgmr.msra.gmra.mrb[22].mxu0 %vm721_vm2, %v2129_v32 }
0x16ed   : > { %v2212_v58 = vpop.f32.mrb[22].mxu0 }
0x16ee   : > { %v2213_v59 = vadd.f32 %v2462_v34, %v2212_v58  ;;  %v2833_v60 = vpop.f32.mrb[23].mxu0 }
0x16f0   : > { %v2216_v61 = vmul.f32 %v2213_v59, %v2213_v59 }
0x16f2   : > { %v2217_v62 = vmul.f32 %v2216_v61, %v2213_v59 }
0x16f4   : > { %v2218_v63 = vmul.f32 0.044715, %v2217_v62 }
0x16f6   : > { %v2219_v0 = vadd.f32 %v2218_v63, %v2213_v59 }
0x16f8   : > { %v2220_v2 = vmul.f32 0.7978846, %v2219_v0 }
0x16fa   : > { %3115 = vtanh.f32 %v2220_v2 }
0x1704   : > { %v3116_v3 = vpop.eup %3115 }
0x1705   : > { %v2222_v4 = vadd.f32 1.0, %v3116_v3 }
0x1707   : > { %v2223_v5 = vmul.f32 0.5, %v2222_v4 }
0x1709   : > { %v2224_v6 = vmul.f32 %v2223_v5, %v2213_v59 }
0x170b   : > { %2867 = vmatmul.mubr.f32.vlgmr.msra.gmra.mrb[16].mxu1 %v2224_v6 }
0x17de   : > { %v2312_v42 = vpop.f32.mrb[16].mxu1 }
0x17df   : > { %v2313_v10 = vadd.f32 %v2312_v42, %v2245_v38  ;;  %v2868_v19 = vpop.f32.mrb[17].mxu1 }
0x17e1   : > { %v2320_v11 = vmul.f32 %v2319_v8, %v2313_v10 }
0x17e3   : > { %v2321_v28 = vadd.f32 %v2320_v11, %v3871_v7  ;;  %v2322_v7 = vld [vmem:[%s4029_s10] sm:$0x1] }
0x17e5   : > { %v2325_v22 = vsel %vm2324_vm7, %v2321_v28, 0.0 }
0x17e6   : > { %2326 = vadd.xlane.f32.xlu1 %v2325_v22 }
0x1873   : > { %v2327_v49 = vpop.xlane.xlu1 %2326 }
0x1874   : > { %v2328_v30 = vmul.f32 0.03125, %v2327_v49 }
0x1876   : > { %v2329_v12 = vsub.f32 %v2321_v28, %v2328_v30 }
0x1878   : > { %v2330_v13 = vmul.f32 %v2329_v12, %v2329_v12 }
0x187a   : > { %v2331_v41 = vsel %vm2324_vm7, %v2330_v13, 0.0 }
0x187b   : > { %2332 = vadd.xlane.f32.xlu0 %v2331_v41 }
0x1908   : > { %v2333_v27 = vpop.xlane.xlu0 %2332 }
0x1909   : > { %v2334_v43 = vmul.f32 0.03125, %v2333_v27 }
0x190b   : > { %v2335_v1 = vadd.f32 1e-06, %v2334_v43 }
0x190d   : > { %3117 = vrsqrt.f32 %v2335_v1 }
0x1917   : > { %v3118_v14 = vpop.eup %3117 }
0x1918   : > { %v2337_v15 = vmul.f32 %v3118_v14, %v2329_v12 }
0x191a   : > { %v2338_v17 = vmul.f32 %v2337_v15, %v2322_v7 }
0x191c   : > { %v2339_v18 = vadd.f32 %v2338_v17, %v2323_v16 }
0x191e   : > { %v2340_v20 = vmul.f32 %v2339_v18, %v2339_v18 }
0x1920   : > { %v2341_v21 = vsel %vm2324_vm7, %v2340_v20, 0.0 }
0x1921   : > { %2342 = vadd.xlane.f32.xlu1 %v2341_v21 }
0x19ae   : > { %v2343_v23 = vpop.xlane.xlu1 %2342 }
0x19af   : > { %v2344_v24 = vmax.f32 %v2343_v23, 1e-24 }
0x19b1   : > { %3119 = vrsqrt.f32 %v2344_v24 }
0x19bb   : > { %v3120_v25 = vpop.eup %3119 }
0x19bc   : > { %v2346_v26 = vmul.f32 %v3120_v25, %v2339_v18 }
0x19be   : > { %2347 = vst.msk [vmem:[%s378_s22] sm:$0x1] %vm2324_vm7, %v2346_v26 }
0x19bf   : > { %3134 = shalt.err (!%p3131_p3)
}
0x19c0   : > { %s3135_s16 = scalar_lea.hbm %s3976_s13, 16  ;;  %s3139_s22 = scalar_lea.hbm %s4030_s11, 32 }
0x19c1   : > { %p3136_p4 = scmp.ne.s32.totalorder %s3976_s13, %s3135_s16  ;;  %p3140_p9 = scmp.lt.u32.totalorder %s3976_s13, %s4030_s11 }
0x19c2   : > { %p3141_p10 = scmp.lt.u32.totalorder %s3139_s22, %s3135_s16  ;;  %p3143_p12 = scmp.lt.u32.totalorder %s3135_s16, %s3976_s13 }
0x19c3   : > { %p3137_p7 = pnand %p3136_p4, %p3292_p5 }
0x19c4   : > { %p3142_p11 = por %p3141_p10, %p3140_p9 }
0x19c5   : > { %p3138_p8 = pneg %p3137_p7 }
0x19c6   : > { %p3144_p13 = por %p3143_p12, %p3142_p11 }
0x19c8   : > { %p3145_p0 = pnand %p3144_p13, %p3138_p8 }
0x19ca   : > { %3148 = shalt.err (!%p3145_p0)
}
0x19cb   : > { %3042 = dma.vmem_to_hbm [thread:$0]  (%p3292_p5), %s3978_s24, 16, %s3976_s13, %s2349_s29  }
0x19cc PF: > { %p3048_p1 = scmp.ge.s32.totalorder %s3183_s20, 2  ;;  %s2373_s14 = sand.u32 1, %s3171_s17  }
0x19cd   : > { %s2374_s21 = scalar_lea.sflag [#allocation3], %s2373_s14 }
0x19ce   : > { %p3045_p2 = pnand %p3048_p1, %p3296_p6 }
0x19d0   : > { %3166 = dma.done.wait (!%p3045_p2), %s2374_s21, 16  }
0x19d1   : > { %3168 = vsyncadd (!%p3045_p2), %s2374_s21, 4294967280  ;;  %s4042_s26 = sld [smem:[#allocation5_spill]]  ;;  %s4043_s19 = sld [smem:[#allocation6_spill]] }
0x19d2   : > { %p21_p3 = scmp.ge.s32.totalorder %s3279_s23, 4   ;;  %s4044_s17 = smov %s3175_s18 }
0x19d3   : > { %s4046_s20 = smov %s3279_s23 }
0x19d4   :  { %23 = sbr.rel (!%p21_p3) target bundleno = 3 (0x3), region = 106 }
0x19d7   : > { %s4045_s18 = smov %s4042_s26 }
0x19db   :  { %2378 = vsyncpa [#allocation3], 1 }
0x19dc   :  { %2380 = vsyncpa [#allocation3 + $0x1], 1 }

</bundles_post_ra>
